<compile_context>
chip_gen: v5e
topology: v5e:2x2
jax: 0.10.0
libtpu: 0.0.40
codegen_flags: <defaults>
</compile_context>

<pallas_src>
import functools

import jax
import jax.numpy as jnp
from jax.experimental import pallas as pl
from jax.experimental.pallas import tpu as pltpu

C1 = 0.01 ** 2
C2 = 0.03 ** 2
_INV9 = 1.0 / 9.0


def _pool3x3(a, lane_dense):
    """Separable valid 3x3 average pool on a (TB, H, W) f32 array.

    Returns (TB, H-2, W) when lane_dense (columns [W-2:] are wraparound
    garbage, sliced off by the wrapper) or (TB, H-2, W-2) otherwise.
    """
    _, H, W = a.shape
    Ho, Wo = H - 2, W - 2
    # Vertical 3-tap sum (sublane direction).
    v = a[:, 0:Ho, :] + a[:, 1:Ho + 1, :] + a[:, 2:Ho + 2, :]
    if lane_dense:
        # Horizontal 3-tap sum via static lane rotations; keeps the result
        # full-W so the final store is an unmasked, lane-dense vst.
        h = (v
             + pltpu.roll(v, shift=W - 1, axis=2)
             + pltpu.roll(v, shift=W - 2, axis=2))
    else:
        h = v[:, :, 0:Wo] + v[:, :, 1:Wo + 1] + v[:, :, 2:Wo + 2]
    return h * _INV9


def _mvs_ssim_kernel(x_ref, y_ref, m_ref, out_ref, mask_out_ref, *, lane_dense):
    x = x_ref[...].astype(jnp.float32)   # (TB, H, W)
    y = y_ref[...].astype(jnp.float32)
    m = m_ref[...].astype(jnp.float32)

    pool = functools.partial(_pool3x3, lane_dense=lane_dense)

    mu_x = pool(x)
    mu_y = pool(y)
    sigma_x = pool(x * x) - mu_x * mu_x
    sigma_y = pool(y * y) - mu_y * mu_y
    sigma_xy = pool(x * y) - mu_x * mu_y

    ssim_n = (2.0 * mu_x * mu_y + C1) * (2.0 * sigma_xy + C2)
    ssim_d = (mu_x * mu_x + mu_y * mu_y + C1) * (sigma_x + sigma_y + C2)
    ssim_mask = pool(m)

    # EUP approximate reciprocal + one Newton-Raphson refinement step.
    inv_d = pl.reciprocal(ssim_d, approx=True)
    inv_d = inv_d * (2.0 - ssim_d * inv_d)

    val = jnp.clip((1.0 - ssim_n * inv_d) * 0.5, 0.0, 1.0)
    out_ref[...] = (ssim_mask * val).astype(out_ref.dtype)
    mask_out_ref[...] = ssim_mask.astype(mask_out_ref.dtype)


def _pick_block_planes(nc, h, w, in_itemsize):
    """Largest divisor of nc whose pipelined VMEM footprint fits the budget."""
    ho = h - 2
    # 3 inputs + 2 f32 outputs, double-buffered, plus slack for in-kernel
    # f32 temporaries (mu/sigma/ssim intermediates).
    per_plane = (2 * (3 * h * w * in_itemsize + 2 * ho * w * 4)
                 + 14 * ho * w * 4)
    budget = 28 * 1024 * 1024   # conservative: fits v7x's 64 MiB VMEM too
    tb = max(1, min(nc, budget // max(per_plane, 1)))
    if nc >= 2:
        # Keep at least 2 grid steps for DMA/compute overlap + megacore.
        tb = min(tb, nc // 2)
    tb = max(tb, 1)
    while nc % tb:
        tb -= 1
    return tb


@jax.jit
def mvs_ssim(x, y, mask):
    """x, y, mask: (N, C, H, W). Returns (output, SSIM_mask), both (N, C, H-2, W-2)."""
    N, C, H, W = x.shape
    Ho, Wo = H - 2, W - 2
    NC = N * C

    # Keep floating inputs at native dtype (kernel casts after DMA); only
    # non-float masks (bool/int) are converted, mirroring torch's mask.float().
    if not jnp.issubdtype(mask.dtype, jnp.floating):
        mask = mask.astype(jnp.float32)

    xf = x.reshape(NC, H, W)
    yf = y.reshape(NC, H, W)
    mf = mask.reshape(NC, H, W)

    in_bytes = max(xf.dtype.itemsize, yf.dtype.itemsize, mf.dtype.itemsize)
    TB = _pick_block_planes(NC, H, W, in_bytes)
    grid = (NC // TB,)

    lane_dense = (W % 128 == 0)
    Wout = W if lane_dense else Wo

    def idx(i):
        return (i, 0, 0)

    in_specs = [pl.BlockSpec((TB, H, W), idx) for _ in range(3)]
    out_specs = [pl.BlockSpec((TB, Ho, Wout), idx) for _ in range(2)]

    cost = pl.CostEstimate(
        flops=60 * NC * Ho * Wo,
        transcendentals=NC * Ho * Wo,
        bytes_accessed=(xf.size * xf.dtype.itemsize
                        + yf.size * yf.dtype.itemsize
                        + mf.size * mf.dtype.itemsize
                        + 2 * NC * Ho * Wout * 4),
    )

    out_w, mask_w = pl.pallas_call(
        functools.partial(_mvs_ssim_kernel, lane_dense=lane_dense),
        out_shape=(
            jax.ShapeDtypeStruct((NC, Ho, Wout), jnp.float32),
            jax.ShapeDtypeStruct((NC, Ho, Wout), jnp.float32),
        ),
        grid_spec=pltpu.PrefetchScalarGridSpec(
            num_scalar_prefetch=0,
            grid=grid,
            in_specs=in_specs,
            out_specs=out_specs,
        ),
        compiler_params=pltpu.CompilerParams(
            dimension_semantics=("parallel",),
            vmem_limit_bytes=48 * 1024 * 1024,
        ),
        cost_estimate=cost,
    )(xf, yf, mf)

    out = out_w[:, :, :Wo].reshape(N, C, Ho, Wo)
    ssim_mask = mask_w[:, :, :Wo].reshape(N, C, Ho, Wo)
    return out, ssim_mask


def _reference(x, y, mask):
    """Pure-JAX reference of the PyTorch forward, for a sanity check."""
    def pool(a):
        H, W = a.shape[-2:]
        s = jnp.zeros(a.shape[:-2] + (H - 2, W - 2), jnp.float32)
        for di in range(3):
            for dj in range(3):
                s = s + a[..., di:di + H - 2, dj:dj + W - 2]
        return s / 9.0

    x = x.astype(jnp.float32)
    y = y.astype(jnp.float32)
    mu_x = pool(x)
    mu_y = pool(y)
    sigma_x = pool(x * x) - mu_x ** 2
    sigma_y = pool(y * y) - mu_y ** 2
    sigma_xy = pool(x * y) - mu_x * mu_y
    ssim_n = (2 * mu_x * mu_y + C1) * (2 * sigma_xy + C2)
    ssim_d = (mu_x ** 2 + mu_y ** 2 + C1) * (sigma_x + sigma_y + C2)
    ssim_mask = pool(mask.astype(jnp.float32))
    out = ssim_mask * jnp.clip((1 - ssim_n / ssim_d) / 2, 0.0, 1.0)
    return out, ssim_mask


if __name__ == "__main__":
    key = jax.random.PRNGKey(0)
    kx, ky, km = jax.random.split(key, 3)

    # Case 1: small NCHW (narrow-W slice path).
    N, C, H, W = 2, 4, 16, 16
    x = jax.random.uniform(kx, (N, C, H, W), jnp.float32)
    y = jax.random.uniform(ky, (N, C, H, W), jnp.float32)
    mask = (jax.random.uniform(km, (N, C, H, W)) > 0.3).astype(jnp.float32)

    out, ssim_mask = mvs_ssim(x, y, mask)
    out, ssim_mask = jax.block_until_ready((out, ssim_mask))
    ref_out, ref_mask = _reference(x, y, mask)
    assert out.shape == (N, C, H - 2, W - 2)
    assert ssim_mask.shape == (N, C, H - 2, W - 2)
    assert jnp.allclose(out, ref_out, atol=1e-5, rtol=1e-5)
    assert jnp.allclose(ssim_mask, ref_mask, atol=1e-6, rtol=1e-6)

    # Case 2: lane-dense path (W multiple of 128, roll-based horizontal pool).
    N2, C2, H2, W2 = 1, 2, 16, 128
    x2 = jax.random.uniform(kx, (N2, C2, H2, W2), jnp.float32)
    y2 = jax.random.uniform(ky, (N2, C2, H2, W2), jnp.float32)
    m2 = (jax.random.uniform(km, (N2, C2, H2, W2)) > 0.3).astype(jnp.float32)

    out2, mask2 = mvs_ssim(x2, y2, m2)
    out2, mask2 = jax.block_until_ready((out2, mask2))
    ref2_out, ref2_mask = _reference(x2, y2, m2)
    assert out2.shape == (N2, C2, H2 - 2, W2 - 2)
    assert jnp.allclose(out2, ref2_out, atol=1e-5, rtol=1e-5)
    assert jnp.allclose(mask2, ref2_mask, atol=1e-6, rtol=1e-6)

    print("KERNEL_OK")
</pallas_src>

<mosaic_0001>
module attributes {stable_mosaic.version = 11 : i64} {
  func.func @_mvs_ssim_kernel(%arg0: i32, %arg1: memref<4x16x16xf32, #tpu.memory_space<vmem>>, %arg2: memref<4x16x16xf32, #tpu.memory_space<vmem>>, %arg3: memref<4x16x16xf32, #tpu.memory_space<vmem>>, %arg4: memref<4x14x14xf32, #tpu.memory_space<vmem>>, %arg5: memref<4x14x14xf32, #tpu.memory_space<vmem>>) attributes {dimension_semantics = [#tpu.dimension_semantics<parallel>], iteration_bounds = array<i64: 2>, scalar_prefetch = 0 : i64, scratch_operands = 0 : i64, tpu.core_type = #tpu.core_type<tc>, window_params = [{transform_indices = @transform_0, window_bounds = array<i64: 4, 16, 16>}, {transform_indices = @transform_1, window_bounds = array<i64: 4, 16, 16>}, {transform_indices = @transform_2, window_bounds = array<i64: 4, 16, 16>}, {transform_indices = @transform_3, window_bounds = array<i64: 4, 14, 14>}, {transform_indices = @transform_4, window_bounds = array<i64: 4, 14, 14>}]} {
    %c0 = arith.constant 0 : index
    %c0_0 = arith.constant 0 : index
    %c0_1 = arith.constant 0 : index
    %0 = vector.load %arg1[%c0, %c0_0, %c0_1] : memref<4x16x16xf32, #tpu.memory_space<vmem>>, vector<4x16x16xf32>
    %c0_2 = arith.constant 0 : index
    %c0_3 = arith.constant 0 : index
    %c0_4 = arith.constant 0 : index
    %1 = vector.load %arg2[%c0_2, %c0_3, %c0_4] : memref<4x16x16xf32, #tpu.memory_space<vmem>>, vector<4x16x16xf32>
    %c0_5 = arith.constant 0 : index
    %c0_6 = arith.constant 0 : index
    %c0_7 = arith.constant 0 : index
    %2 = vector.load %arg3[%c0_5, %c0_6, %c0_7] : memref<4x16x16xf32, #tpu.memory_space<vmem>>, vector<4x16x16xf32>
    %3 = vector.extract_strided_slice %0 {offsets = [0, 0, 0], sizes = [4, 14, 16], strides = [1, 1, 1]} : vector<4x16x16xf32> to vector<4x14x16xf32>
    %4 = vector.extract_strided_slice %0 {offsets = [0, 1, 0], sizes = [4, 14, 16], strides = [1, 1, 1]} : vector<4x16x16xf32> to vector<4x14x16xf32>
    %5 = arith.addf %3, %4 : vector<4x14x16xf32>
    %6 = vector.extract_strided_slice %0 {offsets = [0, 2, 0], sizes = [4, 14, 16], strides = [1, 1, 1]} : vector<4x16x16xf32> to vector<4x14x16xf32>
    %7 = arith.addf %5, %6 : vector<4x14x16xf32>
    %8 = vector.extract_strided_slice %7 {offsets = [0, 0, 0], sizes = [4, 14, 14], strides = [1, 1, 1]} : vector<4x14x16xf32> to vector<4x14x14xf32>
    %9 = vector.extract_strided_slice %7 {offsets = [0, 0, 1], sizes = [4, 14, 14], strides = [1, 1, 1]} : vector<4x14x16xf32> to vector<4x14x14xf32>
    %10 = arith.addf %8, %9 : vector<4x14x14xf32>
    %11 = vector.extract_strided_slice %7 {offsets = [0, 0, 2], sizes = [4, 14, 14], strides = [1, 1, 1]} : vector<4x14x16xf32> to vector<4x14x14xf32>
    %12 = arith.addf %10, %11 : vector<4x14x14xf32>
    %cst = arith.constant 0.111111112 : f32
    %13 = vector.broadcast %cst : f32 to vector<4x14x14xf32>
    %14 = arith.mulf %12, %13 : vector<4x14x14xf32>
    %15 = vector.extract_strided_slice %1 {offsets = [0, 0, 0], sizes = [4, 14, 16], strides = [1, 1, 1]} : vector<4x16x16xf32> to vector<4x14x16xf32>
    %16 = vector.extract_strided_slice %1 {offsets = [0, 1, 0], sizes = [4, 14, 16], strides = [1, 1, 1]} : vector<4x16x16xf32> to vector<4x14x16xf32>
    %17 = arith.addf %15, %16 : vector<4x14x16xf32>
    %18 = vector.extract_strided_slice %1 {offsets = [0, 2, 0], sizes = [4, 14, 16], strides = [1, 1, 1]} : vector<4x16x16xf32> to vector<4x14x16xf32>
    %19 = arith.addf %17, %18 : vector<4x14x16xf32>
    %20 = vector.extract_strided_slice %19 {offsets = [0, 0, 0], sizes = [4, 14, 14], strides = [1, 1, 1]} : vector<4x14x16xf32> to vector<4x14x14xf32>
    %21 = vector.extract_strided_slice %19 {offsets = [0, 0, 1], sizes = [4, 14, 14], strides = [1, 1, 1]} : vector<4x14x16xf32> to vector<4x14x14xf32>
    %22 = arith.addf %20, %21 : vector<4x14x14xf32>
    %23 = vector.extract_strided_slice %19 {offsets = [0, 0, 2], sizes = [4, 14, 14], strides = [1, 1, 1]} : vector<4x14x16xf32> to vector<4x14x14xf32>
    %24 = arith.addf %22, %23 : vector<4x14x14xf32>
    %cst_8 = arith.constant 0.111111112 : f32
    %25 = vector.broadcast %cst_8 : f32 to vector<4x14x14xf32>
    %26 = arith.mulf %24, %25 : vector<4x14x14xf32>
    %27 = arith.mulf %0, %0 : vector<4x16x16xf32>
    %28 = vector.extract_strided_slice %27 {offsets = [0, 0, 0], sizes = [4, 14, 16], strides = [1, 1, 1]} : vector<4x16x16xf32> to vector<4x14x16xf32>
    %29 = vector.extract_strided_slice %27 {offsets = [0, 1, 0], sizes = [4, 14, 16], strides = [1, 1, 1]} : vector<4x16x16xf32> to vector<4x14x16xf32>
    %30 = arith.addf %28, %29 : vector<4x14x16xf32>
    %31 = vector.extract_strided_slice %27 {offsets = [0, 2, 0], sizes = [4, 14, 16], strides = [1, 1, 1]} : vector<4x16x16xf32> to vector<4x14x16xf32>
    %32 = arith.addf %30, %31 : vector<4x14x16xf32>
    %33 = vector.extract_strided_slice %32 {offsets = [0, 0, 0], sizes = [4, 14, 14], strides = [1, 1, 1]} : vector<4x14x16xf32> to vector<4x14x14xf32>
    %34 = vector.extract_strided_slice %32 {offsets = [0, 0, 1], sizes = [4, 14, 14], strides = [1, 1, 1]} : vector<4x14x16xf32> to vector<4x14x14xf32>
    %35 = arith.addf %33, %34 : vector<4x14x14xf32>
    %36 = vector.extract_strided_slice %32 {offsets = [0, 0, 2], sizes = [4, 14, 14], strides = [1, 1, 1]} : vector<4x14x16xf32> to vector<4x14x14xf32>
    %37 = arith.addf %35, %36 : vector<4x14x14xf32>
    %cst_9 = arith.constant 0.111111112 : f32
    %38 = vector.broadcast %cst_9 : f32 to vector<4x14x14xf32>
    %39 = arith.mulf %37, %38 : vector<4x14x14xf32>
    %40 = arith.mulf %14, %14 : vector<4x14x14xf32>
    %41 = arith.subf %39, %40 : vector<4x14x14xf32>
    %42 = arith.mulf %1, %1 : vector<4x16x16xf32>
    %43 = vector.extract_strided_slice %42 {offsets = [0, 0, 0], sizes = [4, 14, 16], strides = [1, 1, 1]} : vector<4x16x16xf32> to vector<4x14x16xf32>
    %44 = vector.extract_strided_slice %42 {offsets = [0, 1, 0], sizes = [4, 14, 16], strides = [1, 1, 1]} : vector<4x16x16xf32> to vector<4x14x16xf32>
    %45 = arith.addf %43, %44 : vector<4x14x16xf32>
    %46 = vector.extract_strided_slice %42 {offsets = [0, 2, 0], sizes = [4, 14, 16], strides = [1, 1, 1]} : vector<4x16x16xf32> to vector<4x14x16xf32>
    %47 = arith.addf %45, %46 : vector<4x14x16xf32>
    %48 = vector.extract_strided_slice %47 {offsets = [0, 0, 0], sizes = [4, 14, 14], strides = [1, 1, 1]} : vector<4x14x16xf32> to vector<4x14x14xf32>
    %49 = vector.extract_strided_slice %47 {offsets = [0, 0, 1], sizes = [4, 14, 14], strides = [1, 1, 1]} : vector<4x14x16xf32> to vector<4x14x14xf32>
    %50 = arith.addf %48, %49 : vector<4x14x14xf32>
    %51 = vector.extract_strided_slice %47 {offsets = [0, 0, 2], sizes = [4, 14, 14], strides = [1, 1, 1]} : vector<4x14x16xf32> to vector<4x14x14xf32>
    %52 = arith.addf %50, %51 : vector<4x14x14xf32>
    %cst_10 = arith.constant 0.111111112 : f32
    %53 = vector.broadcast %cst_10 : f32 to vector<4x14x14xf32>
    %54 = arith.mulf %52, %53 : vector<4x14x14xf32>
    %55 = arith.mulf %26, %26 : vector<4x14x14xf32>
    %56 = arith.subf %54, %55 : vector<4x14x14xf32>
    %57 = arith.mulf %0, %1 : vector<4x16x16xf32>
    %58 = vector.extract_strided_slice %57 {offsets = [0, 0, 0], sizes = [4, 14, 16], strides = [1, 1, 1]} : vector<4x16x16xf32> to vector<4x14x16xf32>
    %59 = vector.extract_strided_slice %57 {offsets = [0, 1, 0], sizes = [4, 14, 16], strides = [1, 1, 1]} : vector<4x16x16xf32> to vector<4x14x16xf32>
    %60 = arith.addf %58, %59 : vector<4x14x16xf32>
    %61 = vector.extract_strided_slice %57 {offsets = [0, 2, 0], sizes = [4, 14, 16], strides = [1, 1, 1]} : vector<4x16x16xf32> to vector<4x14x16xf32>
    %62 = arith.addf %60, %61 : vector<4x14x16xf32>
    %63 = vector.extract_strided_slice %62 {offsets = [0, 0, 0], sizes = [4, 14, 14], strides = [1, 1, 1]} : vector<4x14x16xf32> to vector<4x14x14xf32>
    %64 = vector.extract_strided_slice %62 {offsets = [0, 0, 1], sizes = [4, 14, 14], strides = [1, 1, 1]} : vector<4x14x16xf32> to vector<4x14x14xf32>
    %65 = arith.addf %63, %64 : vector<4x14x14xf32>
    %66 = vector.extract_strided_slice %62 {offsets = [0, 0, 2], sizes = [4, 14, 14], strides = [1, 1, 1]} : vector<4x14x16xf32> to vector<4x14x14xf32>
    %67 = arith.addf %65, %66 : vector<4x14x14xf32>
    %cst_11 = arith.constant 0.111111112 : f32
    %68 = vector.broadcast %cst_11 : f32 to vector<4x14x14xf32>
    %69 = arith.mulf %67, %68 : vector<4x14x14xf32>
    %70 = arith.mulf %14, %26 : vector<4x14x14xf32>
    %71 = arith.subf %69, %70 : vector<4x14x14xf32>
    %cst_12 = arith.constant 2.000000e+00 : f32
    %72 = vector.broadcast %cst_12 : f32 to vector<4x14x14xf32>
    %73 = arith.mulf %72, %14 : vector<4x14x14xf32>
    %74 = arith.mulf %73, %26 : vector<4x14x14xf32>
    %cst_13 = arith.constant 9.99999974E-5 : f32
    %75 = vector.broadcast %cst_13 : f32 to vector<4x14x14xf32>
    %76 = arith.addf %74, %75 : vector<4x14x14xf32>
    %cst_14 = arith.constant 2.000000e+00 : f32
    %77 = vector.broadcast %cst_14 : f32 to vector<4x14x14xf32>
    %78 = arith.mulf %77, %71 : vector<4x14x14xf32>
    %cst_15 = arith.constant 8.99999984E-4 : f32
    %79 = vector.broadcast %cst_15 : f32 to vector<4x14x14xf32>
    %80 = arith.addf %78, %79 : vector<4x14x14xf32>
    %81 = arith.mulf %76, %80 : vector<4x14x14xf32>
    %82 = arith.mulf %14, %14 : vector<4x14x14xf32>
    %83 = arith.mulf %26, %26 : vector<4x14x14xf32>
    %84 = arith.addf %82, %83 : vector<4x14x14xf32>
    %cst_16 = arith.constant 9.99999974E-5 : f32
    %85 = vector.broadcast %cst_16 : f32 to vector<4x14x14xf32>
    %86 = arith.addf %84, %85 : vector<4x14x14xf32>
    %87 = arith.addf %41, %56 : vector<4x14x14xf32>
    %cst_17 = arith.constant 8.99999984E-4 : f32
    %88 = vector.broadcast %cst_17 : f32 to vector<4x14x14xf32>
    %89 = arith.addf %87, %88 : vector<4x14x14xf32>
    %90 = arith.mulf %86, %89 : vector<4x14x14xf32>
    %91 = vector.extract_strided_slice %2 {offsets = [0, 0, 0], sizes = [4, 14, 16], strides = [1, 1, 1]} : vector<4x16x16xf32> to vector<4x14x16xf32>
    %92 = vector.extract_strided_slice %2 {offsets = [0, 1, 0], sizes = [4, 14, 16], strides = [1, 1, 1]} : vector<4x16x16xf32> to vector<4x14x16xf32>
    %93 = arith.addf %91, %92 : vector<4x14x16xf32>
    %94 = vector.extract_strided_slice %2 {offsets = [0, 2, 0], sizes = [4, 14, 16], strides = [1, 1, 1]} : vector<4x16x16xf32> to vector<4x14x16xf32>
    %95 = arith.addf %93, %94 : vector<4x14x16xf32>
    %96 = vector.extract_strided_slice %95 {offsets = [0, 0, 0], sizes = [4, 14, 14], strides = [1, 1, 1]} : vector<4x14x16xf32> to vector<4x14x14xf32>
    %97 = vector.extract_strided_slice %95 {offsets = [0, 0, 1], sizes = [4, 14, 14], strides = [1, 1, 1]} : vector<4x14x16xf32> to vector<4x14x14xf32>
    %98 = arith.addf %96, %97 : vector<4x14x14xf32>
    %99 = vector.extract_strided_slice %95 {offsets = [0, 0, 2], sizes = [4, 14, 14], strides = [1, 1, 1]} : vector<4x14x16xf32> to vector<4x14x14xf32>
    %100 = arith.addf %98, %99 : vector<4x14x14xf32>
    %cst_18 = arith.constant 0.111111112 : f32
    %101 = vector.broadcast %cst_18 : f32 to vector<4x14x14xf32>
    %102 = arith.mulf %100, %101 : vector<4x14x14xf32>
    %103 = tpu.reciprocal %90 {approx = true} : vector<4x14x14xf32> -> vector<4x14x14xf32>
    %104 = arith.mulf %90, %103 : vector<4x14x14xf32>
    %cst_19 = arith.constant 2.000000e+00 : f32
    %105 = vector.broadcast %cst_19 : f32 to vector<4x14x14xf32>
    %106 = arith.subf %105, %104 : vector<4x14x14xf32>
    %107 = arith.mulf %103, %106 : vector<4x14x14xf32>
    %108 = arith.mulf %81, %107 : vector<4x14x14xf32>
    %cst_20 = arith.constant 1.000000e+00 : f32
    %109 = vector.broadcast %cst_20 : f32 to vector<4x14x14xf32>
    %110 = arith.subf %109, %108 : vector<4x14x14xf32>
    %cst_21 = arith.constant 5.000000e-01 : f32
    %111 = vector.broadcast %cst_21 : f32 to vector<4x14x14xf32>
    %112 = arith.mulf %110, %111 : vector<4x14x14xf32>
    %cst_22 = arith.constant 0.000000e+00 : f32
    %cst_23 = arith.constant 1.000000e+00 : f32
    %113 = vector.broadcast %cst_22 : f32 to vector<4x14x14xf32>
    %114 = arith.maximumf %113, %112 : vector<4x14x14xf32>
    %115 = vector.broadcast %cst_23 : f32 to vector<4x14x14xf32>
    %116 = arith.minimumf %115, %114 : vector<4x14x14xf32>
    %117 = arith.mulf %102, %116 : vector<4x14x14xf32>
    %c0_24 = arith.constant 0 : index
    %c0_25 = arith.constant 0 : index
    %c0_26 = arith.constant 0 : index
    %118 = vector.load %arg4[%c0_24, %c0_25, %c0_26] : memref<4x14x14xf32, #tpu.memory_space<vmem>>, vector<4x14x14xf32>
    tpu.vector_store %arg4[%c0_24, %c0_25, %c0_26], %117 {strides = array<i32>} : memref<4x14x14xf32, #tpu.memory_space<vmem>>, vector<4x14x14xf32>,
    %c0_27 = arith.constant 0 : index
    %c0_28 = arith.constant 0 : index
    %c0_29 = arith.constant 0 : index
    %119 = vector.load %arg5[%c0_27, %c0_28, %c0_29] : memref<4x14x14xf32, #tpu.memory_space<vmem>>, vector<4x14x14xf32>
    tpu.vector_store %arg5[%c0_27, %c0_28, %c0_29], %102 {strides = array<i32>} : memref<4x14x14xf32, #tpu.memory_space<vmem>>, vector<4x14x14xf32>,
    return
  }
  func.func @transform_0(%arg0: i32) -> (i32, i32, i32) {
    %c0_i32 = arith.constant 0 : i32
    %c0_i32_0 = arith.constant 0 : i32
    %c0_i32_1 = arith.constant 0 : i32
    return %arg0, %c0_i32, %c0_i32_0 : i32, i32, i32
  }
  func.func @transform_1(%arg0: i32) -> (i32, i32, i32) {
    %c0_i32 = arith.constant 0 : i32
    %c0_i32_0 = arith.constant 0 : i32
    %c0_i32_1 = arith.constant 0 : i32
    return %arg0, %c0_i32, %c0_i32_0 : i32, i32, i32
  }
  func.func @transform_2(%arg0: i32) -> (i32, i32, i32) {
    %c0_i32 = arith.constant 0 : i32
    %c0_i32_0 = arith.constant 0 : i32
    %c0_i32_1 = arith.constant 0 : i32
    return %arg0, %c0_i32, %c0_i32_0 : i32, i32, i32
  }
  func.func @transform_3(%arg0: i32) -> (i32, i32, i32) {
    %c0_i32 = arith.constant 0 : i32
    %c0_i32_0 = arith.constant 0 : i32
    %c0_i32_1 = arith.constant 0 : i32
    return %arg0, %c0_i32, %c0_i32_0 : i32, i32, i32
  }
  func.func @transform_4(%arg0: i32) -> (i32, i32, i32) {
    %c0_i32 = arith.constant 0 : i32
    %c0_i32_0 = arith.constant 0 : i32
    %c0_i32_1 = arith.constant 0 : i32
    return %arg0, %c0_i32, %c0_i32_0 : i32, i32, i32
  }
}

</mosaic_0001>

<bundles_post_ra>
// kernel: mvs_ssim.1
= control target key start
LH: loop header
LB: loop body
LE: loop exit
PB: predicated region body
PF: predicated region fallthrough
CT: control target
= control target key end

     0   :  { %10 = vsyncpa [#allocation3], 0  ;;  %s2924_s0 = inlined_call_operand.hbm [shape: f32[8,16,16], index: 0, kind: input, shape index: {}]   ;;  %s2925_s1 = inlined_call_operand.hbm [shape: f32[8,16,16], index: 1, kind: input, shape index: {}]   ;;  %s2926_s2 = inlined_call_operand.hbm [shape: f32[8,16,16], index: 2, kind: input, shape index: {}]   ;;  %s2927_s3 = inlined_call_operand.vmem [shape: f32[8,14,14], index: 3, kind: output, shape index: {0}]   ;;  %s2928_s4 = inlined_call_operand.vmem [shape: f32[8,14,14], index: 4, kind: output, shape index: {1}]  }
   0x1   :  { %12 = vsyncpa [#allocation3 + $0x1], 0 }
   0x2   :  { %13 = vsyncpa [#allocation5], 0 }
   0x3   :  { %15 = vsyncpa [#allocation5 + $0x1], 0  ;;  %s1886_s15 = smov 0   ;;  %s1888_s16 = smov 0  }
   0x4   :  { %s1890_s17 = smov 0   ;;  %s1892_s18 = smov 0  }
   0x5 LB: > { %s1905_s19 = sadd.s32 4294967295, %s1855_s18   ;;  %s1908_s20 = sadd.s32 1, %s1855_s18   ;;  %s1855_s18 = sphi %s1892_s18, %s3023_s18   ;;  %s1851_s17 = sphi %s1890_s17, %s3022_s17   ;;  %s1847_s16 = sphi %s1888_s16, %s3021_s16   ;;  %s1843_s15 = sphi %s1886_s15, %s3020_s15  }
   0x6   : > { %s25_s21 = ssub.s32 %s1855_s18, %s1908_s20  ;;  %s28_s22 = sadd.s32 1, %s1851_s17 }
   0x7   : > { %p26_p0 = scmp.eq.s32.totalorder %s25_s21, 0  ;;  %p35_p1 = scmp.ne.s32.totalorder %s1851_s17, %s1847_s16 }
   0x8   : > { %p36_p2 = scmp.eq.s32.totalorder %s1855_s18, 0  ;;  %p41_p3 = scmp.ne.s32.totalorder %s1847_s16, %s1843_s15 }
   0x9   : > { %s1918_s23 = scalar_select %p26_p0, %s1851_s17, %s28_s22  }
   0xa   : > { %p37_p4 = por %p36_p2, %p35_p1  ;;  %p42_p5 = scmp.eq.s32.totalorder %s1905_s19, 0 }
   0xb   : > { %p1674_p6 = scmp.lt.s32.totalorder %s1855_s18, 2  ;;  %s169_s25 = sand.u32 1, %s1851_s17  }
   0xc   : > { %p1922_p7 = por %p42_p5, %p41_p3  ;;  %s1929_s26 = sshll.u32 %s169_s25, 6 }
   0xd   : > { %s1932_s27 = sshll.u32 %s1855_s18, 6  ;;  %p1934_p8 = pnand %p1674_p6, %p37_p4 }
   0xe   : > { %s192_s29 = sand.u32 1, %s1855_s18   ;;  %s202_s6 = scalar_lea.hbm %s2925_s1, %s1932_s27 }
   0xf   : > { %s203_s7 = sshll.u32 %s202_s6, 4  ;;  %s196_s8 = scalar_lea.vmem [#allocation4], %s1929_s26  ;;  %s204_s7 = int_to_ptr.hbm [resolvable:$true] %s203_s7 }
  0x10   : > { %s205_s9 = sshll.u32 %s196_s8, 4  ;;  %s1944_s10 = scalar_lea.sflag [#allocation5], %s192_s29  ;;  %s206_s9 = int_to_ptr.vmem [resolvable:$true] %s205_s9 }
  0x11   : > { %s1727_s11 = sshra.s32 %s204_s7, 4  ;;  %p1731_p10 = pneg %p1934_p8  ;;  %s1728_s11 = int_to_ptr.hbm [resolvable:$true] %s1727_s11 }
  0x12   : > { %s1729_s12 = scalar_lea.hbm %s1728_s11, 64  ;;  %s1734_s15 = scalar_lea.hbm %s2925_s1, 128 }
  0x13   : > { %p1730_p9 = scmp.ne.s32.totalorder %s1728_s11, %s1729_s12  ;;  %p1735_p13 = scmp.lt.s32.totalorder %s1728_s11, %s2925_s1 }
  0x14   : > { %p1736_p0 = scmp.lt.s32.totalorder %s1734_s15, %s1729_s12 }
  0x15   : > { %p1732_p11 = pnand %p1731_p10, %p1730_p9 }
  0x16   : > { %p1737_p1 = por %p1736_p0, %p1735_p13 }
  0x17   : > { %p1733_p12 = pneg %p1732_p11 }
  0x19   : > { %p1738_p2 = pnand %p1737_p1, %p1733_p12 }
  0x1b   : > { %1741 = shalt.err (!%p1738_p2)
}
  0x1c   : > { %s1857_s29 = smov 128   ;;  %s1858_s30 = smov 8  }
  0x1d   : > { %1670 = dma.hbm_to_vmem [thread:$0]  (!%p1934_p8), %s204_s7, 1024, %s206_s9, %s1944_s10, %s1857_s29, %s1857_s29, %s1858_s30  }
  0x1e   : > { %p1638_p3 = scmp.ge.s32.totalorder %s1855_s18, 1  ;;  %p236_p4 = scmp.lt.s32.totalorder %s1855_s18, 3 }
  0x1f   : > { %s179_s11 = scalar_lea.hbm %s2924_s0, %s1932_s27  ;;  %s173_s13 = scalar_lea.vmem [#allocation2], %s1929_s26 }
  0x20   : > { %p1965_p5 = pnand %p1638_p3, %p236_p4  ;;  %s180_s12 = sshll.u32 %s179_s11, 4  ;;  %s181_s12 = int_to_ptr.hbm [resolvable:$true] %s180_s12 }
  0x21   : > { %s182_s14 = sshll.u32 %s173_s13, 4  ;;  %s170_s15 = scalar_lea.sflag [#allocation3], %s169_s25  ;;  %s183_s14 = int_to_ptr.vmem [resolvable:$true] %s182_s14 }
  0x22   : > { %s1757_s21 = sshra.s32 %s181_s12, 4  ;;  %s1764_s22 = scalar_lea.hbm %s2924_s0, 128  ;;  %s1758_s21 = int_to_ptr.hbm [resolvable:$true] %s1757_s21 }
  0x23   : > { %s1759_s7 = scalar_lea.hbm %s1758_s21, 64  ;;  %p1765_p12 = scmp.lt.s32.totalorder %s1758_s21, %s2924_s0 }
  0x24   : > { %p1760_p6 = scmp.ne.s32.totalorder %s1758_s21, %s1759_s7  ;;  %p1766_p13 = scmp.lt.s32.totalorder %s1764_s22, %s1759_s7 }
  0x26   : > { %p1762_p9 = pnand %p1760_p6, %p1731_p10  ;;  %p1767_p0 = por %p1766_p13, %p1765_p12 }
  0x28   : > { %p1763_p11 = pneg %p1762_p9 }
  0x2a   : > { %p1768_p1 = pnand %p1767_p0, %p1763_p11 }
  0x2c   : > { %1771 = shalt.err (!%p1768_p1)
}
  0x2d   : > { %1667 = dma.hbm_to_vmem [thread:$0]  (!%p1934_p8), %s181_s12, 1024, %s183_s14, %s170_s15, %s1857_s29, %s1857_s29, %s1858_s30  }
  0x2e   : > { %s225_s13 = scalar_lea.hbm %s2926_s2, %s1932_s27  ;;  %s219_s9 = scalar_lea.vmem [#allocation6], %s1929_s26 }
  0x2f   : > { %s226_s18 = sshll.u32 %s225_s13, 4  ;;  %s228_s21 = sshll.u32 %s219_s9, 4  ;;  %s227_s18 = int_to_ptr.hbm [resolvable:$true] %s226_s18  ;;  %s229_s21 = int_to_ptr.vmem [resolvable:$true] %s228_s21 }
  0x30   : > { %s1787_s7 = sshra.s32 %s227_s18, 4  ;;  %s1794_s12 = scalar_lea.hbm %s2926_s2, 128  ;;  %s1788_s7 = int_to_ptr.hbm [resolvable:$true] %s1787_s7 }
  0x31   : > { %s1789_s22 = scalar_lea.hbm %s1788_s7, 64  ;;  %p1795_p6 = scmp.lt.s32.totalorder %s1788_s7, %s2926_s2 }
  0x32   : > { %p1790_p2 = scmp.ne.s32.totalorder %s1788_s7, %s1789_s22  ;;  %p1796_p9 = scmp.lt.s32.totalorder %s1794_s12, %s1789_s22 }
  0x34   : > { %p1792_p3 = pnand %p1790_p2, %p1731_p10  ;;  %p1797_p11 = por %p1796_p9, %p1795_p6 }
  0x36   : > { %p1793_p4 = pneg %p1792_p3 }
  0x38   : > { %p1798_p12 = pnand %p1797_p11, %p1793_p4 }
  0x3a   : > { %1801 = shalt.err (!%p1798_p12)
}
  0x3b   : > { %1673 = dma.hbm_to_vmem [thread:$0]  (!%p1934_p8), %s227_s18, 1024, %s229_s21, %s1944_s10, %s1857_s29, %s1857_s29, %s1858_s30  }
  0x3c   : > { %240 = sbr.rel (%p1965_p5) target bundleno = 450 (0x1c2), region = 32 }
  0x41   : > { %s242_s26 = sand.u32 1, %s1847_s16  }
  0x42   : > { %s2013_s27 = sshll.u32 %s242_s26, 6  ;;  %s243_s25 = scalar_lea.sflag [#allocation3], %s242_s26 }
  0x43   : > { %s2016_s11 = scalar_lea.vmem [#allocation2], %s2013_s27 }
  0x44   : > { %1834 = dma.done.wait (%p1922_p7), %s243_s25, 1024  }
  0x45   : > { %1836 = vsyncadd (%p1922_p7), %s243_s25, 4294966272  ;;  %s252_s28 = sand.u32 1, %s1905_s19   ;;  %s2024_s29 = scalar_lea.vmem [#allocation4], %s2013_s27 }
  0x46   : > { %s253_s10 = scalar_lea.sflag [#allocation5], %s252_s28 }
  0x47   : > { %1838 = dma.done.wait (%p1922_p7), %s253_s10, 2048  }
  0x48   : > { %1840 = vsyncadd (%p1922_p7), %s253_s10, 4294965248  ;;  %v2031_v0 = vld [vmem:[%s2016_s11 + $0x18] sm:$0xff]  ;;  %v2034_v1 = vld [vmem:[%s2016_s11 + $0x8] sm:$0xff]  ;;  %vm358_vm0 = vcmask 1046528   ;;  %vm387_vm1 = vcmask 1045504   ;;  %s1859_s24 = smov 127  }
  0x49   : > { %v2037_v2 = vld [vmem:[%s2016_s11 + $0x28] sm:$0xff]  ;;  %v363_v3 = vrot.slane %v2031_v0, 1  ;;  %v392_v4 = vrot.slane %v2031_v0, 2  ;;  %v360_v5 = vrot.slane %v2034_v1, 1  ;;  %v389_v6 = vrot.slane %v2034_v1, 2  ;;  %v2044_v7 = vld [vmem:[%s2016_s11 + $0x10] sm:$0xff] }
  0x4a   : > { %v2047_v8 = vld [vmem:[%s2016_s11] sm:$0xff]  ;;  %v366_v9 = vrot.slane %v2037_v2, 1  ;;  %v395_v10 = vrot.slane %v2037_v2, 2  ;;  %v362_v11 = vrot.slane %v2044_v7, 1  ;;  %v391_v15 = vrot.slane %v2044_v7, 2  ;;  %v2069_v24 = vld [vmem:[%s2016_s11 + $0x38] sm:$0xff] }
  0x4b   : > { %v2053_v12 = vld [vmem:[%s2016_s11 + $0x20] sm:$0xff]  ;;  %v382_v13 = vadd.f32 %v363_v3, %v2031_v0  ;;  %v380_v14 = vadd.f32 %v360_v5, %v2034_v1  ;;  %v359_v16 = vrot.slane %v2047_v8, 1  ;;  %v388_v19 = vrot.slane %v2047_v8, 2  ;;  %v2072_v25 = vld [vmem:[%s2016_s11 + $0x30] sm:$0xff]  ;;  %s1860_s30 = smov 126   ;;  %v2124_v49 = vld [vmem:[%s2024_s29 + $0x8] sm:$0xff] }
  0x4c   : > { %v384_v17 = vadd.f32 %v366_v9, %v2037_v2  ;;  %v364_v18 = vsel %vm358_vm0, %v362_v11, %v363_v3  ;;  %v365_v20 = vrot.slane %v2053_v12, 1  ;;  %v393_v29 = vsel %vm387_vm1, %v391_v15, %v392_v4  ;;  %v2121_v48 = vld [vmem:[%s2024_s29] sm:$0xff]  ;;  %v2138_v55 = vld [vmem:[%s2024_s29 + $0x18] sm:$0xff]  ;;  %v2141_v56 = vld [vmem:[%s2024_s29 + $0x10] sm:$0xff]  ;;  %s2558_s5 = scalar_lea.vmem [#allocation6], %s2013_s27  ;;  %s1642_s13 = sshll.u32 %s1905_s19, 2 }
  0x4d   : > { %v2063_v21 = vadd.f32 %v392_v4, %v382_v13  ;;  %v2065_v22 = vadd.f32 %v389_v6, %v380_v14  ;;  %v361_v23 = vsel %vm358_vm0, %v359_v16, %v360_v5  ;;  %v381_v28 = vadd.f32 %v364_v18, %v2044_v7  ;;  %v2144_v57 = vld [vmem:[%s2024_s29 + $0x20] sm:$0xff]  ;;  %v2147_v58 = vld [vmem:[%s2024_s29 + $0x28] sm:$0xff]  ;;  %v2173_v16 = vld [vmem:[%s2024_s29 + $0x30] sm:$0xff]  ;;  %p313_p7 = scmp.lt.s32.totalorder %s1642_s13, 7 }
  0x4e   : > { %v2074_v26 = vadd.f32 %v395_v10, %v384_v17  ;;  %v367_v27 = vsel %vm358_vm0, %v365_v20, %v366_v9  ;;  %v379_v30 = vadd.f32 %v361_v23, %v2047_v8  ;;  %v394_v31 = vrot.slane %v2053_v12, 2  ;;  %v2176_v17 = vld [vmem:[%s2024_s29 + $0x38] sm:$0xff] }
  0x4f   : > { %430 = vrot.lane.b32.xlu1 %v2063_v21, %s1859_s24  ;;  %426 = vrot.lane.b32.xlu0 %v2065_v22, %s1859_s24  ;;  %v390_v32 = vsel %vm387_vm1, %v388_v19, %v389_v6  ;;  %v383_v33 = vadd.f32 %v367_v27, %v2053_v12  ;;  %v369_v34 = vrot.slane %v2069_v24, 1  ;;  %v368_v35 = vrot.slane %v2072_v25, 1  ;;  %s3025_s13 = smov (!%p313_p7, %s1642_s13), 7 }
  0x50   : > { %434 = vrot.lane.b32.xlu2 %v2074_v26, %s1859_s24  ;;  %v396_v36 = vsel %vm387_vm1, %v394_v31, %v395_v10  ;;  %v2092_v37 = vadd.f32 %v393_v29, %v381_v28  ;;  %v2094_v38 = vadd.f32 %v390_v32, %v379_v30  ;;  %v398_v40 = vrot.slane %v2069_v24, 2  ;;  %s1656_s19 = sshll.u32 %s3025_s13, 4 }
  0x51   : > { %v2096_v39 = vadd.f32 %v396_v36, %v383_v33  ;;  %v370_v41 = vsel %vm358_vm0, %v368_v35, %v369_v34  ;;  %v397_v42 = vrot.slane %v2072_v25, 2  ;;  %v386_v43 = vadd.f32 %v369_v34, %v2069_v24  ;;  %s2846_s21 = scalar_lea.vmem %s2928_s4, %s1656_s19  ;;  %s2866_s6 = scalar_lea.vmem %s2927_s3, %s1656_s19 }
  0x52   : > { %v385_v44 = vadd.f32 %v370_v41, %v2072_v25  ;;  %v504_v50 = vrot.slane %v2121_v48, 1  ;;  %v505_v51 = vrot.slane %v2124_v49, 1  ;;  %v532_v53 = vrot.slane %v2121_v48, 2 }
  0x53   : > { %v399_v45 = vsel %vm387_vm1, %v397_v42, %v398_v40  ;;  %v2110_v46 = vadd.f32 %v398_v40, %v386_v43  ;;  %v533_v54 = vrot.slane %v2124_v49, 2  ;;  %v508_v62 = vrot.slane %v2138_v55, 1 }
  0x54   : > { %v2112_v47 = vadd.f32 %v399_v45, %v385_v44  ;;  %v506_v52 = vsel %vm358_vm0, %v504_v50, %v505_v51  ;;  %v525_v61 = vadd.f32 %v505_v51, %v2124_v49  ;;  %v507_v63 = vrot.slane %v2141_v56, 1 }
  0x55   : > { %v524_v59 = vadd.f32 %v506_v52, %v2121_v48  ;;  %v534_v60 = vsel %vm387_vm1, %v532_v53, %v533_v54  ;;  %v510_v3 = vrot.slane %v2144_v57, 1  ;;  %v511_v4 = vrot.slane %v2147_v58, 1 }
  0x56   : > { %v2164_v6 = vadd.f32 %v533_v54, %v525_v61  ;;  %v536_v9 = vrot.slane %v2138_v55, 2  ;;  %v509_v10 = vsel %vm358_vm0, %v507_v63, %v508_v62  ;;  %v535_v11 = vrot.slane %v2141_v56, 2 }
  0x57   : > { %428 = vrot.lane.b32.xlu1 %v2092_v37, %s1859_s24  ;;  %424 = vrot.lane.b32.xlu0 %v2094_v38, %s1859_s24  ;;  %v2162_v5 = vadd.f32 %v534_v60, %v524_v59  ;;  %v512_v13 = vsel %vm358_vm0, %v510_v3, %v511_v4  ;;  %v538_v14 = vrot.slane %v2144_v57, 2  ;;  %v539_v15 = vrot.slane %v2147_v58, 2 }
  0x58   : > { %432 = vrot.lane.b32.xlu2 %v2096_v39, %s1859_s24  ;;  %v527_v18 = vadd.f32 %v508_v62, %v2138_v55  ;;  %v526_v19 = vadd.f32 %v509_v10, %v2141_v56  ;;  %v537_v20 = vsel %vm387_vm1, %v535_v11, %v536_v9  ;;  %v528_v23 = vadd.f32 %v512_v13, %v2144_v57 }
  0x59   : > { %v513_v27 = vrot.slane %v2173_v16, 1  ;;  %v514_v28 = vrot.slane %v2176_v17, 1  ;;  %v540_v29 = vsel %vm387_vm1, %v538_v14, %v539_v15  ;;  %v541_v34 = vrot.slane %v2173_v16, 2 }
  0x5a   : > { %v2191_v30 = vadd.f32 %v536_v9, %v527_v18  ;;  %v2193_v31 = vadd.f32 %v537_v20, %v526_v19  ;;  %v2195_v32 = vadd.f32 %v540_v29, %v528_v23  ;;  %v542_v35 = vrot.slane %v2176_v17, 2 }
  0x5b   : > { %v515_v33 = vsel %vm358_vm0, %v513_v27, %v514_v28  ;;  %v529_v40 = vadd.f32 %v511_v4, %v2147_v58  ;;  %v531_v42 = vadd.f32 %v514_v28, %v2176_v17  ;;  %v640_v50 = vmul.f32 %v2047_v8, %v2047_v8 }
  0x5c   : > { %v530_v36 = vadd.f32 %v515_v33, %v2173_v16  ;;  %v543_v41 = vsel %vm387_vm1, %v541_v34, %v542_v35  ;;  %v641_v51 = vmul.f32 %v2034_v1, %v2034_v1  ;;  %v642_v61 = vmul.f32 %v2044_v7, %v2044_v7 }
  0x5d   : > { %v2212_v44 = vadd.f32 %v539_v15, %v529_v40  ;;  %v2214_v45 = vadd.f32 %v542_v35, %v531_v42  ;;  %v656_v52 = vrot.slane %v640_v50, 1  ;;  %v684_v59 = vrot.slane %v640_v50, 2 }
  0x5e   : > { %v2210_v43 = vadd.f32 %v543_v41, %v530_v36  ;;  %v657_v53 = vrot.slane %v641_v51, 1  ;;  %v685_v60 = vrot.slane %v641_v51, 2  ;;  %v643_v62 = vmul.f32 %v2031_v0, %v2031_v0 }
  0x5f   : > { %438 = vrot.lane.b32.xlu1 %v2110_v46, %s1859_s24  ;;  %436 = vrot.lane.b32.xlu0 %v2112_v47, %s1859_s24  ;;  %v659_v4 = vrot.slane %v642_v61, 1  ;;  %v687_v11 = vrot.slane %v642_v61, 2  ;;  %v645_v15 = vmul.f32 %v2037_v2, %v2037_v2  ;;  %v644_v18 = vmul.f32 %v2053_v12, %v2053_v12 }
  0x60   : > { %456 = vrot.lane.b32.xlu2 %v2094_v38, %s1860_s30  ;;  %v658_v54 = vsel %vm358_vm0, %v656_v52, %v657_v53  ;;  %v686_v3 = vsel %vm387_vm1, %v684_v59, %v685_v60  ;;  %v660_v9 = vrot.slane %v643_v62, 1  ;;  %v688_v14 = vrot.slane %v643_v62, 2 }
  0x61   : > { %v676_v63 = vadd.f32 %v658_v54, %v640_v50  ;;  %v646_v19 = vmul.f32 %v2072_v25, %v2072_v25  ;;  %v647_v20 = vmul.f32 %v2069_v24, %v2069_v24  ;;  %v677_v27 = vadd.f32 %v657_v53, %v641_v51 }
  0x62   : > { %v661_v13 = vsel %vm358_vm0, %v659_v4, %v660_v9  ;;  %v689_v28 = vsel %vm387_vm1, %v687_v11, %v688_v14  ;;  %v679_v29 = vadd.f32 %v660_v9, %v643_v62  ;;  %v663_v33 = vrot.slane %v645_v15, 1 }
  0x63   : > { %v2244_v10 = vadd.f32 %v686_v3, %v676_v63  ;;  %v678_v23 = vadd.f32 %v661_v13, %v642_v61  ;;  %v662_v34 = vrot.slane %v644_v18, 1  ;;  %v665_v35 = vrot.slane %v646_v19, 1 }
  0x64   : > { %v666_v36 = vrot.slane %v647_v20, 1  ;;  %v2264_v41 = vadd.f32 %v685_v60, %v677_v27  ;;  %v2266_v42 = vadd.f32 %v688_v14, %v679_v29  ;;  %v691_v50 = vrot.slane %v645_v15, 2 }
  0x65   : > { %2948 = vst [vmem:[#allocation9_spill] sm:$0xff] %v2244_v10  ;;  %v2262_v40 = vadd.f32 %v689_v28, %v678_v23  ;;  %v664_v52 = vsel %vm358_vm0, %v662_v34, %v663_v33  ;;  %v690_v51 = vrot.slane %v644_v18, 2  ;;  %v693_v54 = vrot.slane %v646_v19, 2 }
  0x66   : > { %2950 = vst [vmem:[#allocation11_spill] sm:$0xff] %v2266_v42  ;;  %v667_v53 = vsel %vm358_vm0, %v665_v35, %v666_v36  ;;  %v694_v59 = vrot.slane %v647_v20, 2  ;;  %v681_v61 = vadd.f32 %v663_v33, %v645_v15  ;;  %v680_v62 = vadd.f32 %v664_v52, %v644_v18 }
  0x67   : > { %460 = vrot.lane.b32.xlu1 %v2092_v37, %s1860_s30  ;;  %458 = vrot.lane.b32.xlu0 %v2065_v22, %s1860_s30  ;;  %2949 = vst [vmem:[#allocation10_spill] sm:$0xff] %v2262_v40  ;;  %v692_v60 = vsel %vm387_vm1, %v690_v51, %v691_v50  ;;  %v682_v63 = vadd.f32 %v667_v53, %v646_v19  ;;  %vm1456_vm2 = vcmask 113664   ;;  %vm1458_vm3 = vcmask 111616  }
  0x68   : > { %462 = vrot.lane.b32.xlu2 %v2063_v21, %s1860_s30  ;;  %v695_v3 = vsel %vm387_vm1, %v693_v54, %v694_v59  ;;  %v2280_v9 = vadd.f32 %v691_v50, %v681_v61  ;;  %v2282_v11 = vadd.f32 %v692_v60, %v680_v62  ;;  %v683_v14 = vadd.f32 %v666_v36, %v647_v20 }
  0x69   : > { %v2284_v13 = vadd.f32 %v695_v3, %v682_v63  ;;  %v809_v20 = vmul.f32 %v2124_v49, %v2124_v49  ;;  %v808_v23 = vmul.f32 %v2121_v48, %v2121_v48  ;;  %v810_v27 = vmul.f32 %v2141_v56, %v2141_v56 }
  0x6a   : > { %2951 = vst [vmem:[#allocation12_spill] sm:$0xff] %v2280_v9  ;;  %v2294_v18 = vadd.f32 %v694_v59, %v683_v14  ;;  %v811_v28 = vmul.f32 %v2138_v55, %v2138_v55  ;;  %v812_v61 = vmul.f32 %v2144_v57, %v2144_v57  ;;  %v813_v62 = vmul.f32 %v2147_v58, %v2147_v58 }
  0x6b   : > { %2952 = vst [vmem:[#allocation13_spill] sm:$0xff] %v2282_v11  ;;  %v825_v29 = vrot.slane %v809_v20, 1  ;;  %v824_v33 = vrot.slane %v808_v23, 1  ;;  %v827_v34 = vrot.slane %v810_v27, 1  ;;  %v853_v53 = vrot.slane %v809_v20, 2 }
  0x6c   : > { %2953 = vst [vmem:[#allocation14_spill] sm:$0xff] %v2284_v13  ;;  %v828_v35 = vrot.slane %v811_v28, 1  ;;  %v852_v59 = vrot.slane %v808_v23, 2  ;;  %v855_v3 = vrot.slane %v810_v27, 2  ;;  %v856_v14 = vrot.slane %v811_v28, 2 }
  0x6d   : > { %2954 = vst [vmem:[#allocation15_spill] sm:$0xff] %v2294_v18  ;;  %v826_v54 = vsel %vm358_vm0, %v824_v33, %v825_v29 }
  0x6e   : > { %v829_v63 = vsel %vm358_vm0, %v827_v34, %v828_v35  ;;  %v857_v34 = vsel %vm387_vm1, %v855_v3, %v856_v14  ;;  %v814_v3 = vmul.f32 %v2173_v16, %v2173_v16 }
  0x6f   : > { %466 = vrot.lane.b32.xlu1 %v2074_v26, %s1860_s30  ;;  %464 = vrot.lane.b32.xlu0 %v2096_v39, %s1860_s30  ;;  %v846_v33 = vadd.f32 %v829_v63, %v810_v27 }
  0x70   : > { %468 = vrot.lane.b32.xlu2 %v2112_v47, %s1860_s30 }
  0x77   : > { %568 = vrot.lane.b32.xlu1 %v2162_v5, %s1859_s24  ;;  %470 = vrot.lane.b32.xlu0 %v2110_v46, %s1860_s30 }
  0x78   : > { %570 = vrot.lane.b32.xlu2 %v2164_v6, %s1859_s24 }
  0x7f   : > { %574 = vrot.lane.b32.xlu1 %v2191_v30, %s1859_s24  ;;  %572 = vrot.lane.b32.xlu0 %v2193_v31, %s1859_s24 }
  0x80   : > { %576 = vrot.lane.b32.xlu2 %v2195_v32, %s1859_s24 }
  0x87   : > { %580 = vrot.lane.b32.xlu1 %v2210_v43, %s1859_s24  ;;  %578 = vrot.lane.b32.xlu0 %v2212_v44, %s1859_s24 }
  0x88   : > { %582 = vrot.lane.b32.xlu2 %v2214_v45, %s1859_s24 }
  0x8f   : > { %602 = vrot.lane.b32.xlu1 %v2164_v6, %s1860_s30  ;;  %600 = vrot.lane.b32.xlu0 %v2162_v5, %s1860_s30 }
  0x90   : > { %604 = vrot.lane.b32.xlu2 %v2193_v31, %s1860_s30 }
  0x97   : > { %608 = vrot.lane.b32.xlu1 %v2195_v32, %s1860_s30  ;;  %606 = vrot.lane.b32.xlu0 %v2191_v30, %s1860_s30 }
  0x98   : > { %610 = vrot.lane.b32.xlu2 %v2212_v44, %s1860_s30 }
  0x9f   : > { %614 = vrot.lane.b32.xlu1 %v2214_v45, %s1860_s30  ;;  %612 = vrot.lane.b32.xlu0 %v2210_v43, %s1860_s30 }
  0xa0   : > { %720 = vrot.lane.b32.xlu2 %v2244_v10, %s1859_s24 }
  0xa7   : > { %724 = vrot.lane.b32.xlu1 %v2262_v40, %s1859_s24  ;;  %722 = vrot.lane.b32.xlu0 %v2264_v41, %s1859_s24 }
  0xa8   : > { %726 = vrot.lane.b32.xlu2 %v2266_v42, %s1859_s24 }
  0xaa   : > { %v2278_v4 = vpop.permute.xlu2 %434 }
  0xaf   : > { %730 = vrot.lane.b32.xlu1 %v2280_v9, %s1859_s24  ;;  %728 = vrot.lane.b32.xlu0 %v2282_v11, %s1859_s24 }
  0xb0   : > { %732 = vrot.lane.b32.xlu2 %v2284_v13, %s1859_s24 }
  0xb2   : > { %v2292_v15 = vpop.permute.xlu2 %432 }
  0xb7   : > { %752 = vrot.lane.b32.xlu1 %v2244_v10, %s1860_s30  ;;  %734 = vrot.lane.b32.xlu0 %v2294_v18, %s1859_s24 }
  0xb8   : > { %754 = vrot.lane.b32.xlu2 %v2264_v41, %s1860_s30 }
  0xba   : > { %v457_v19 = vpop.permute.xlu2 %456 }
  0xbf   : > { %758 = vrot.lane.b32.xlu1 %v2266_v42, %s1860_s30  ;;  %756 = vrot.lane.b32.xlu0 %v2262_v40, %s1860_s30  ;;  %v845_v40 = vadd.f32 %v825_v29, %v809_v20  ;;  %v831_v42 = vrot.slane %v813_v62, 1 }
  0xc0   : > { %760 = vrot.lane.b32.xlu2 %v2282_v11, %s1860_s30 }
  0xc1   : > { %v431_v36 = vpop.permute.xlu1 %430  ;;  %v427_v50 = vpop.permute.xlu0 %426 }
  0xc2   : > { %v451_v52 = vadd.f32 %v431_v36, %v2063_v21  ;;  %v463_v51 = vpop.permute.xlu2 %462  ;;  %v844_v21 = vadd.f32 %v826_v54, %v808_v23  ;;  %v830_v36 = vrot.slane %v812_v61, 1  ;;  %v2338_v23 = vadd.f32 %v857_v34, %v846_v33 }
  0xc3   : > { %v858_v54 = vrot.slane %v812_v61, 2 }
  0xc4   : > { %v2322_v60 = vadd.f32 %v463_v51, %v451_v52  ;;  %v854_v52 = vsel %vm387_vm1, %v852_v59, %v853_v53  ;;  %v832_v27 = vsel %vm358_vm0, %v830_v36, %v831_v42  ;;  %v815_v59 = vmul.f32 %v2176_v17, %v2176_v17 }
  0xc5   : > { %v2336_v11 = vadd.f32 %v854_v52, %v844_v21  ;;  %v833_v21 = vrot.slane %v814_v3, 1 }
  0xc7   : > { %764 = vrot.lane.b32.xlu1 %v2284_v13, %s1860_s30  ;;  %762 = vrot.lane.b32.xlu0 %v2280_v9, %s1860_s30  ;;  %v2334_v13 = vadd.f32 %v853_v53, %v845_v40  ;;  %v859_v9 = vrot.slane %v813_v62, 2  ;;  %v849_v40 = vadd.f32 %v831_v42, %v813_v62  ;;  %v834_v53 = vrot.slane %v815_v59, 1 }
  0xc8   : > { %766 = vrot.lane.b32.xlu2 %v2294_v18, %s1860_s30  ;;  %v861_v62 = vrot.slane %v814_v3, 2 }
  0xc9   : > { %v429_v51 = vpop.permute.xlu1 %428  ;;  %v425_v10 = vpop.permute.xlu0 %424 }
  0xca   : > { %v448_v20 = vadd.f32 %v425_v10, %v2094_v38  ;;  %v469_v29 = vpop.permute.xlu2 %468  ;;  %v848_v38 = vadd.f32 %v832_v27, %v812_v61  ;;  %v847_v10 = vadd.f32 %v828_v35, %v811_v28  ;;  %v2361_v61 = vadd.f32 %v859_v9, %v849_v40 }
  0xcb   : > { %v862_v28 = vrot.slane %v815_v59, 2  ;;  %v835_v35 = vsel %vm358_vm0, %v833_v21, %v834_v53 }
  0xcc   : > { %v2341_v63 = vadd.f32 %v457_v19, %v448_v20  ;;  %v860_v19 = vsel %vm387_vm1, %v858_v54, %v859_v9  ;;  %v2359_v18 = vadd.f32 %v856_v14, %v847_v10  ;;  %v850_v27 = vadd.f32 %v835_v35, %v814_v3 }
  0xcd   : > { %v2357_v20 = vadd.f32 %v860_v19, %v848_v38  ;;  %v449_v54 = vadd.f32 %v427_v50, %v2065_v22  ;;  %v450_v14 = vadd.f32 %v429_v51, %v2092_v37  ;;  %v863_v9 = vsel %vm387_vm1, %v861_v62, %v862_v28 }
  0xce   : > { %v453_v22 = vadd.f32 %v2278_v4, %v2074_v26  ;;  %v452_v37 = vadd.f32 %v2292_v15, %v2096_v39  ;;  %v977_v26 = vmul.f32 %v2124_v49, %v2034_v1 }
  0xcf   : > { %890 = vrot.lane.b32.xlu1 %v2334_v13, %s1859_s24  ;;  %888 = vrot.lane.b32.xlu0 %v2336_v11, %s1859_s24 }
  0xd0   : > { %892 = vrot.lane.b32.xlu2 %v2338_v23, %s1859_s24  ;;  %v1021_v62 = vrot.slane %v977_v26, 2 }
  0xd1   : > { %v439_v33 = vpop.permute.xlu1 %438  ;;  %v437_v36 = vpop.permute.xlu0 %436 }
  0xd2   : > { %v454_v52 = vadd.f32 %v437_v36, %v2112_v47  ;;  %v2355_v34 = vpop.permute.xlu2 %570  ;;  %v851_v47 = vadd.f32 %v834_v53, %v815_v59  ;;  %v2381_v59 = vadd.f32 %v863_v9, %v850_v27  ;;  %v455_v39 = vadd.f32 %v439_v33, %v2110_v46 }
  0xd3   : > { %v978_v27 = vmul.f32 %v2141_v56, %v2044_v7  ;;  %v980_v46 = vmul.f32 %v2144_v57, %v2053_v12  ;;  %v2423_v33 = vmul.f32 %v2147_v58, %v2037_v2 }
  0xd4   : > { %v2363_v42 = vadd.f32 %v469_v29, %v454_v52  ;;  %v2379_v21 = vadd.f32 %v862_v28, %v851_v47  ;;  %v976_v52 = vmul.f32 %v2121_v48, %v2047_v8  ;;  %v993_v28 = vrot.slane %v977_v26, 1 }
  0xd5   : > { %v979_v47 = vmul.f32 %v2138_v55, %v2031_v0  ;;  %v995_v55 = vrot.slane %v978_v27, 1  ;;  %v998_v12 = vrot.slane %v980_v46, 1  ;;  %v999_v56 = vrot.slane %v2423_v33, 1 }
  0xd6   : > { %v992_v4 = vrot.slane %v976_v52, 1  ;;  %v1020_v49 = vrot.slane %v976_v52, 2  ;;  %v1013_v7 = vadd.f32 %v993_v28, %v977_v26 }
  0xd7   : > { %896 = vrot.lane.b32.xlu1 %v2357_v20, %s1859_s24  ;;  %894 = vrot.lane.b32.xlu0 %v2359_v18, %s1859_s24  ;;  %v996_v0 = vrot.slane %v979_v47, 1 }
  0xd8   : > { %898 = vrot.lane.b32.xlu2 %v2361_v61, %s1859_s24  ;;  %v994_v1 = vsel %vm358_vm0, %v992_v4, %v993_v28  ;;  %v2445_v4 = vadd.f32 %v1021_v62, %v1013_v7  ;;  %v1027_v28 = vrot.slane %v2423_v33, 2 }
  0xd9   : > { %v461_v29 = vpop.permute.xlu1 %460  ;;  %v459_v38 = vpop.permute.xlu0 %458 }
  0xda   : > { %v482_v10 = vadd.f32 %v461_v29, %v450_v14  ;;  %v2375_v40 = vadd.f32 %v459_v38, %v449_v54  ;;  %v2377_v19 = vpop.permute.xlu2 %576  ;;  %v1012_v54 = vadd.f32 %v994_v1, %v976_v52  ;;  %v1022_v14 = vsel %vm387_vm1, %v1020_v49, %v1021_v62  ;;  %2956 = vst [vmem:[#allocation17_spill] sm:$0xff] %v2445_v4 }
  0xdb   : > { %v2443_v52 = vmul.f32 %v2176_v17, %v2069_v24  ;;  %v1015_v1 = vadd.f32 %v996_v0, %v979_v47 }
  0xdc   : > { %v490_v58 = vmul.f32 0.11111111, %v482_v10  ;;  %v2436_v38 = vadd.f32 %v1022_v14, %v1012_v54  ;;  %v1000_v10 = vsel %vm358_vm0, %v998_v12, %v999_v56 }
  0xdd   : > { %v1002_v17 = vrot.slane %v2443_v52, 1 }
  0xde   : > { %2955 = vst [vmem:[#allocation16_spill] sm:$0xff] %v2436_v38  ;;  %v2459_v62 = vmul.f32 %v490_v58, %v490_v58 }
  0xdf   : > { %902 = vrot.lane.b32.xlu1 %v2379_v21, %s1859_s24  ;;  %900 = vrot.lane.b32.xlu0 %v2381_v59, %s1859_s24 }
  0xe0   : > { %920 = vrot.lane.b32.xlu2 %v2336_v11, %s1860_s30 }
  0xe1   : > { %v467_v50 = vpop.permute.xlu1 %466  ;;  %v465_v51 = vpop.permute.xlu0 %464 }
  0xe2   : > { %v2393_v3 = vadd.f32 %v467_v50, %v453_v22  ;;  %v2395_v53 = vadd.f32 %v465_v51, %v452_v37  ;;  %v2397_v36 = vpop.permute.xlu2 %582  ;;  %v1024_v22 = vrot.slane %v979_v47, 2  ;;  %v997_v37 = vsel %vm358_vm0, %v995_v55, %v996_v0 }
  0xe3   : > { %v1023_v50 = vrot.slane %v978_v27, 2  ;;  %v982_v51 = vmul.f32 %v2173_v16, %v2072_v25  ;;  %v1014_v49 = vadd.f32 %v997_v37, %v978_v27  ;;  %v1016_v25 = vadd.f32 %v1000_v10, %v980_v46 }
  0xe4   : > { %v2472_v12 = vadd.f32 %v1024_v22, %v1015_v1  ;;  %v489_v1 = vmul.f32 0.11111111, %v2375_v40 }
  0xe5   : > { %v1025_v24 = vsel %vm387_vm1, %v1023_v50, %v1024_v22  ;;  %v1001_v16 = vrot.slane %v982_v51, 1  ;;  %v1029_v37 = vrot.slane %v982_v51, 2  ;;  %v1030_v50 = vrot.slane %v2443_v52, 2 }
  0xe6   : > { %2959 = vst [vmem:[#allocation20_spill] sm:$0xff] %v2472_v12 }
  0xe7   : > { %924 = vrot.lane.b32.xlu1 %v2338_v23, %s1860_s30  ;;  %922 = vrot.lane.b32.xlu0 %v2334_v13, %s1860_s30 }
  0xe8   : > { %926 = vrot.lane.b32.xlu2 %v2359_v18, %s1860_s30 }
  0xe9   : > { %v2410_v15 = vpop.permute.xlu1 %568  ;;  %v471_v35 = vpop.permute.xlu0 %470 }
  0xea   : > { %v2412_v8 = vadd.f32 %v471_v35, %v455_v39  ;;  %v605_v48 = vpop.permute.xlu2 %604  ;;  %v1146_v39 = vmul.f32 2.0, %v490_v58 }
  0xef   : > { %930 = vrot.lane.b32.xlu1 %v2361_v61, %s1860_s30  ;;  %928 = vrot.lane.b32.xlu0 %v2357_v20, %s1860_s30 }
  0xf0   : > { %932 = vrot.lane.b32.xlu2 %v2381_v59, %s1860_s30 }
  0xf1   : > { %v2433_v2 = vpop.permute.xlu1 %574  ;;  %v573_v57 = vpop.permute.xlu0 %572 }
  0xf2   : > { %v594_v9 = vadd.f32 %v573_v57, %v2193_v31  ;;  %v611_v29 = vpop.permute.xlu2 %610  ;;  %v1026_v31 = vrot.slane %v980_v46, 2  ;;  %v493_v46 = vmul.f32 0.11111111, %v2393_v3  ;;  %v593_v3 = vadd.f32 %v2355_v34, %v2164_v6 }
  0xf3   : > { %v592_v6 = vadd.f32 %v2410_v15, %v2162_v5 }
  0xf4   : > { %v626_v26 = vadd.f32 %v605_v48, %v594_v9  ;;  %v1028_v0 = vsel %vm387_vm1, %v1026_v31, %v1027_v28  ;;  %v2478_v9 = vadd.f32 %v1025_v24, %v1014_v49  ;;  %v1149_v22 = vmul.f32 2.0, %v493_v46 }
  0xf5   : > { %v2482_v10 = vadd.f32 %v1028_v0, %v1016_v25  ;;  %v2495_v49 = vmul.f32 %v493_v46, %v493_v46 }
  0xf6   : > { %v634_v35 = vmul.f32 0.11111111, %v626_v26  ;;  %2960 = vst [vmem:[#allocation21_spill] sm:$0xff] %v2478_v9 }
  0xf7   : > { %1056 = vrot.lane.b32.xlu1 %v2436_v38, %s1859_s24  ;;  %934 = vrot.lane.b32.xlu0 %v2379_v21, %s1860_s30  ;;  %2961 = vst [vmem:[#allocation22_spill] sm:$0xff] %v2482_v10 }
  0xf8   : > { %v2455_v48 = vmul.f32 %v1146_v39, %v634_v35  ;;  %1058 = vrot.lane.b32.xlu2 %v2445_v4, %s1859_s24  ;;  %v2461_v47 = vmul.f32 %v634_v35, %v634_v35  ;;  %v2463_v27 = vmul.f32 %v634_v35, %v490_v58  ;;  %v1003_v58 = vsel %vm358_vm0, %v1001_v16, %v1002_v17 }
  0xf9   : > { %v2465_v54 = vpop.permute.xlu1 %580  ;;  %v579_v14 = vpop.permute.xlu0 %578  ;;  %v1018_v39 = vadd.f32 %v1003_v58, %v982_v51  ;;  %v1017_v35 = vadd.f32 %v999_v56, %v2423_v33 }
  0xfa   : > { %2957 = vst [vmem:[#allocation18_spill] sm:$0xff] %v2455_v48  ;;  %v597_v55 = vadd.f32 %v579_v14, %v2212_v44  ;;  %v2470_v7 = vpop.permute.xlu2 %720  ;;  %v2476_v57 = vadd.f32 %v2461_v47, %v2459_v62  ;;  %v488_v44 = vmul.f32 0.11111111, %v2341_v63  ;;  %v1019_v63 = vadd.f32 %v1002_v17, %v2443_v52 }
  0xfb   : > { %2958 = vst [vmem:[#allocation19_spill] sm:$0xff] %v2463_v27  ;;  %v2515_v17 = vadd.f32 %v1027_v28, %v1017_v35  ;;  %v1145_v14 = vmul.f32 2.0, %v489_v1  ;;  %v492_v28 = vmul.f32 0.11111111, %v2395_v53  ;;  %v595_v35 = vadd.f32 %v2433_v2, %v2191_v30 }
  0xfc   : > { %v629_v26 = vadd.f32 %v611_v29, %v597_v55  ;;  %v1031_v29 = vsel %vm387_vm1, %v1029_v37, %v1030_v50  ;;  %v1144_v5 = vmul.f32 2.0, %v488_v44 }
  0xfd   : > { %v2513_v15 = vadd.f32 %v1031_v29, %v1018_v39  ;;  %2966 = vst [vmem:[#allocation27_spill] sm:$0xff] %v2515_v17  ;;  %v596_v39 = vadd.f32 %v2377_v19, %v2195_v32 }
  0xfe   : > { %v637_v31 = vmul.f32 0.11111111, %v629_v26 }
  0xff   : > { %1062 = vrot.lane.b32.xlu1 %v2472_v12, %s1859_s24  ;;  %1060 = vrot.lane.b32.xlu0 %v2478_v9, %s1859_s24  ;;  %2965 = vst [vmem:[#allocation26_spill] sm:$0xff] %v2513_v15 }
 0x100   : > { %v2499_v34 = vmul.f32 %v1149_v22, %v637_v31  ;;  %1064 = vrot.lane.b32.xlu2 %v2482_v10, %s1859_s24  ;;  %v2503_v40 = vmul.f32 %v637_v31, %v637_v31  ;;  %v2505_v33 = vmul.f32 %v637_v31, %v493_v46  ;;  %v2517_v46 = vadd.f32 %v1030_v50, %v1019_v63 }
 0x101   : > { %v603_v56 = vpop.permute.xlu1 %602  ;;  %v601_v51 = vpop.permute.xlu0 %600  ;;  %v491_v22 = vmul.f32 0.11111111, %v2322_v60  ;;  %v2528_v31 = vmul.f32 %v489_v1, %v489_v1 }
 0x102   : > { %2962 = vst [vmem:[#allocation23_spill] sm:$0xff] %v2499_v34  ;;  %v625_v24 = vadd.f32 %v603_v56, %v593_v3  ;;  %v624_v25 = vadd.f32 %v601_v51, %v592_v6  ;;  %v2507_v16 = vpop.permute.xlu2 %726  ;;  %v2511_v52 = vadd.f32 %v2503_v40, %v2495_v49  ;;  %v2525_v3 = vmul.f32 %v488_v44, %v488_v44 }
 0x103   : > { %2963 = vst [vmem:[#allocation24_spill] sm:$0xff] %v2505_v33  ;;  %v1147_v2 = vmul.f32 2.0, %v491_v22  ;;  %v1148_v51 = vmul.f32 2.0, %v492_v28 }
 0x104   : > { %2964 = vst [vmem:[#allocation25_spill] sm:$0xff] %v2511_v52  ;;  %v633_v0 = vmul.f32 0.11111111, %v625_v24  ;;  %v632_v55 = vmul.f32 0.11111111, %v624_v25 }
 0x105   : > { %2967 = vst [vmem:[#allocation28_spill] sm:$0xff] %v2517_v46 }
 0x106   : > { %v2519_v58 = vmul.f32 %v1145_v14, %v633_v0  ;;  %v2521_v37 = vmul.f32 %v632_v55, %v632_v55  ;;  %v2523_v26 = vmul.f32 %v1144_v5, %v632_v55  ;;  %v2535_v50 = vmul.f32 %v633_v0, %v633_v0  ;;  %v2562_v5 = vld [vmem:[%s2558_s5 + $0x8] sm:$0xff] }
 0x107   : > { %1068 = vrot.lane.b32.xlu1 %v2513_v15, %s1859_s24  ;;  %1066 = vrot.lane.b32.xlu0 %v2515_v17, %s1859_s24  ;;  %v2547_v53 = vmul.f32 %v633_v0, %v489_v1  ;;  %v2555_v30 = vmul.f32 %v632_v55, %v488_v44  ;;  %v342_v1 = vld [vmem:[%s2558_s5] sm:$0xff]  ;;  %v494_v14 = vmul.f32 0.11111111, %v2363_v42  ;;  %v2565_v0 = vmul.f32 %v492_v28, %v492_v28 }
 0x108   : > { %2968 = vst [vmem:[#allocation29_spill] sm:$0xff] %v2519_v58  ;;  %1070 = vrot.lane.b32.xlu2 %v2517_v46, %s1859_s24  ;;  %v2545_v60 = vadd.f32 %v2521_v37, %v2525_v3  ;;  %v2551_v6 = vadd.f32 %v2535_v50, %v2528_v31  ;;  %v495_v44 = vmul.f32 0.11111111, %v2412_v8  ;;  %v1241_v42 = vrot.slane %v2562_v5, 1 }
 0x109   : > { %2969 = vst [vmem:[#allocation30_spill] sm:$0xff] %v2523_v26  ;;  %v609_v29 = vpop.permute.xlu1 %608  ;;  %v607_v63 = vpop.permute.xlu0 %606  ;;  %v599_v8 = vadd.f32 %v2397_v36, %v2214_v45  ;;  %v1268_v58 = vrot.slane %v342_v1, 2  ;;  %v1269_v34 = vrot.slane %v2562_v5, 2 }
 0x10a   : > { %2970 = vst [vmem:[#allocation31_spill] sm:$0xff] %v2547_v53  ;;  %v628_v32 = vadd.f32 %v609_v29, %v596_v39  ;;  %v627_v19 = vadd.f32 %v607_v63, %v595_v35  ;;  %v2553_v56 = vpop.permute.xlu2 %732  ;;  %v2567_v39 = vmul.f32 %v491_v22, %v491_v22  ;;  %v1240_v63 = vrot.slane %v342_v1, 1 }
 0x10b   : > { %2971 = vst [vmem:[#allocation32_spill] sm:$0xff] %v2555_v30 }
 0x10c   : > { %v636_v24 = vmul.f32 0.11111111, %v628_v32  ;;  %v635_v25 = vmul.f32 0.11111111, %v627_v19  ;;  %v1242_v26 = vsel %vm358_vm0, %v1240_v63, %v1241_v42 }
 0x10d   : > { %v1260_v63 = vadd.f32 %v1242_v26, %v342_v1 }
 0x10e   : > { %v2570_v55 = vmul.f32 %v1148_v51, %v636_v24  ;;  %v2572_v35 = vmul.f32 %v635_v25, %v635_v25  ;;  %v2574_v29 = vmul.f32 %v1147_v2, %v635_v25  ;;  %v2581_v32 = vmul.f32 %v636_v24, %v636_v24 }
 0x10f   : > { %1090 = vrot.lane.b32.xlu1 %v2445_v4, %s1860_s30  ;;  %1088 = vrot.lane.b32.xlu0 %v2436_v38, %s1860_s30  ;;  %v2583_v19 = vmul.f32 %v636_v24, %v492_v28  ;;  %v598_v2 = vadd.f32 %v2465_v54, %v2210_v43  ;;  %v1151_v54 = vmul.f32 2.0, %v495_v44 }
 0x110   : > { %2972 = vst [vmem:[#allocation33_spill] sm:$0xff] %v2570_v55  ;;  %1092 = vrot.lane.b32.xlu2 %v2478_v9, %s1860_s30  ;;  %v2593_v51 = vadd.f32 %v2572_v35, %v2567_v39  ;;  %v2599_v24 = vadd.f32 %v2581_v32, %v2565_v0  ;;  %v347_v9 = vld [vmem:[%s2558_s5 + $0x28] sm:$0xff] }
 0x111   : > { %2973 = vst [vmem:[#allocation34_spill] sm:$0xff] %v2574_v29  ;;  %v2595_v29 = vmul.f32 %v635_v25, %v491_v22  ;;  %v615_v55 = vpop.permute.xlu1 %614  ;;  %v613_v28 = vpop.permute.xlu0 %612  ;;  %v344_v22 = vld [vmem:[%s2558_s5 + $0x10] sm:$0xff]  ;;  %v345_v25 = vld [vmem:[%s2558_s5 + $0x18] sm:$0xff] }
 0x112   : > { %2974 = vst [vmem:[#allocation35_spill] sm:$0xff] %v2583_v19  ;;  %v631_v45 = vadd.f32 %v615_v55, %v599_v8  ;;  %v630_v36 = vadd.f32 %v613_v28, %v598_v2  ;;  %v755_v43 = vpop.permute.xlu2 %754  ;;  %v1150_v19 = vmul.f32 2.0, %v494_v14  ;;  %v2611_v55 = vmul.f32 %v494_v14, %v494_v14 }
 0x113   : > { %2975 = vst [vmem:[#allocation36_spill] sm:$0xff] %v2595_v29  ;;  %v2613_v8 = vmul.f32 %v495_v44, %v495_v44  ;;  %v1270_v28 = vsel %vm387_vm1, %v1268_v58, %v1269_v34  ;;  %v1272_v27 = vrot.slane %v345_v25, 2 }
 0x114   : > { %2976 = vst [vmem:[#allocation37_spill] sm:$0xff] %v2599_v24  ;;  %v639_v30 = vmul.f32 0.11111111, %v631_v45  ;;  %v638_v53 = vmul.f32 0.11111111, %v630_v36  ;;  %v1244_v45 = vrot.slane %v345_v25, 1 }
 0x115   : > { %v346_v24 = vld [vmem:[%s2558_s5 + $0x20] sm:$0xff] }
 0x116   : > { %v2605_v29 = vmul.f32 %v1151_v54, %v639_v30  ;;  %v2607_v33 = vmul.f32 %v638_v53, %v638_v53  ;;  %v2609_v38 = vmul.f32 %v1150_v19, %v638_v53  ;;  %v2619_v2 = vmul.f32 %v639_v30, %v639_v30 }
 0x117   : > { %1096 = vrot.lane.b32.xlu1 %v2482_v10, %s1860_s30  ;;  %1094 = vrot.lane.b32.xlu0 %v2472_v12, %s1860_s30  ;;  %v1243_v19 = vrot.slane %v344_v22, 1  ;;  %v2634_v1 = vmul.f32 %v639_v30, %v495_v44  ;;  %v2639_v10 = vadd.f32 %v1270_v28, %v1260_v63  ;;  %v1246_v44 = vrot.slane %v346_v24, 1  ;;  %v2983_v28 = vld [vmem:[#allocation13_spill] sm:$0xff] }
 0x118   : > { %2977 = vst [vmem:[#allocation38_spill] sm:$0xff] %v2605_v29  ;;  %1098 = vrot.lane.b32.xlu2 %v2515_v17, %s1860_s30  ;;  %v2626_v36 = vadd.f32 %v2607_v33, %v2611_v55  ;;  %v2632_v26 = vadd.f32 %v2619_v2, %v2613_v8  ;;  %v2636_v29 = vmul.f32 %v638_v53, %v494_v14  ;;  %v1271_v17 = vrot.slane %v344_v22, 2 }
 0x119   : > { %2978 = vst [vmem:[#allocation39_spill] sm:$0xff] %v2609_v38  ;;  %v2628_v54 = vpop.permute.xlu1 %724  ;;  %v723_v38 = vpop.permute.xlu0 %722  ;;  %v1245_v48 = vsel %vm358_vm0, %v1243_v19, %v1244_v45  ;;  %v1247_v14 = vrot.slane %v347_v9, 1  ;;  %v1274_v30 = vrot.slane %v346_v24, 2 }
 0x11a   : > { %2979 = vst [vmem:[#allocation40_spill] sm:$0xff] %v2619_v2  ;;  %v745_v58 = vadd.f32 %v723_v38, %v2264_v41  ;;  %v761_v12 = vpop.permute.xlu2 %760  ;;  %v1262_v53 = vadd.f32 %v1245_v48, %v344_v22  ;;  %v1261_v41 = vadd.f32 %v1241_v42, %v2562_v5  ;;  %v1263_v38 = vadd.f32 %v1244_v45, %v345_v25  ;;  %v2986_v2 = vld [vmem:[#allocation11_spill] sm:$0xff] }
 0x11b   : > { %2980 = vst [vmem:[#allocation41_spill] sm:$0xff] %v2632_v26  ;;  %v1275_v45 = vrot.slane %v347_v9, 2 }
 0x11c   : > { %2981 = vst [vmem:[#allocation42_spill] sm:$0xff] %v2634_v1  ;;  %v777_v4 = vadd.f32 %v755_v43, %v745_v58  ;;  %v2659_v5 = vadd.f32 %v1269_v34, %v1261_v41  ;;  %v2661_v42 = vadd.f32 %v1272_v27, %v1263_v38  ;;  %v1248_v58 = vsel %vm358_vm0, %v1246_v44, %v1247_v14  ;;  %v2985_v44 = vld [vmem:[#allocation15_spill] sm:$0xff] }
 0x11d   : > { %2982 = vst [vmem:[#allocation43_spill] sm:$0xff] %v2636_v29  ;;  %v348_v29 = vld [vmem:[%s2558_s5 + $0x30] sm:$0xff]  ;;  %v1264_v34 = vadd.f32 %v1248_v58, %v346_v24 }
 0x11e   : > { %v2644_v52 = vmul.f32 0.11111111, %v777_v4  ;;  %v1273_v4 = vsel %vm387_vm1, %v1271_v17, %v1272_v27  ;;  %v349_v17 = vld [vmem:[%s2558_s5 + $0x38] sm:$0xff]  ;;  %v1265_v27 = vadd.f32 %v1247_v14, %v347_v9  ;;  %v1249_v41 = vrot.slane %v348_v29, 1 }
 0x11f   : > { %1102 = vrot.lane.b32.xlu1 %v2517_v46, %s1860_s30  ;;  %1100 = vrot.lane.b32.xlu0 %v2513_v15, %s1860_s30  ;;  %v2657_v22 = vadd.f32 %v1273_v4, %v1262_v53  ;;  %v2984_v15 = vld [vmem:[#allocation9_spill] sm:$0xff]  ;;  %v1276_v53 = vsel %vm387_vm1, %v1274_v30, %v1275_v45  ;;  %v1250_v38 = vrot.slane %v349_v17, 1  ;;  %v1277_v24 = vrot.slane %v348_v29, 2 }
 0x120   : > { %1304 = vrot.lane.b32.xlu2 %v2639_v10, %s1859_s24  ;;  %v744_v46 = vadd.f32 %v2470_v7, %v2984_v15  ;;  %v2684_v9 = vadd.f32 %v1276_v53, %v1264_v34 }
 0x121   : > { %v731_v43 = vpop.permute.xlu1 %730  ;;  %v729_v63 = vpop.permute.xlu0 %728  ;;  %v1251_v58 = vsel %vm358_vm0, %v1249_v41, %v1250_v38  ;;  %v1267_v53 = vadd.f32 %v1250_v38, %v349_v17 }
 0x122   : > { %v748_v19 = vadd.f32 %v729_v63, %v2983_v28  ;;  %v767_v48 = vpop.permute.xlu2 %766 }
 0x124   : > { %v780_v25 = vadd.f32 %v761_v12, %v748_v19  ;;  %v2682_v19 = vadd.f32 %v1275_v45, %v1265_v27  ;;  %v1278_v12 = vrot.slane %v349_v17, 2  ;;  %v1266_v45 = vadd.f32 %v1251_v58, %v348_v29  ;;  %v2987_v27 = vld [vmem:[#allocation10_spill] sm:$0xff] }
 0x125   : > { %v2988_v17 = vld [vmem:[#allocation14_spill] sm:$0xff] }
 0x126   : > { %v2666_v1 = vmul.f32 0.11111111, %v780_v25  ;;  %v750_v38 = vadd.f32 %v2553_v56, %v2988_v17 }
 0x127   : > { %1308 = vrot.lane.b32.xlu1 %v2657_v22, %s1859_s24  ;;  %1306 = vrot.lane.b32.xlu0 %v2659_v5, %s1859_s24 }
 0x128   : > { %1310 = vrot.lane.b32.xlu2 %v2661_v42, %s1859_s24 }
 0x129   : > { %v753_v4 = vpop.permute.xlu1 %752  ;;  %v735_v7 = vpop.permute.xlu0 %734 }
 0x12a   : > { %v776_v15 = vadd.f32 %v753_v4, %v744_v46  ;;  %v751_v63 = vadd.f32 %v735_v7, %v2985_v44  ;;  %v2680_v28 = vpop.permute.xlu2 %892  ;;  %v747_v46 = vadd.f32 %v2507_v16, %v2986_v2 }
 0x12c   : > { %v784_v14 = vmul.f32 0.11111111, %v776_v15  ;;  %v783_v25 = vadd.f32 %v767_v48, %v751_v63  ;;  %v746_v48 = vadd.f32 %v2628_v54, %v2987_v27  ;;  %v2709_v54 = vadd.f32 %v1278_v12, %v1267_v53 }
 0x12e   : > { %v800_v30 = vsub.f32 %v784_v14, %v2525_v3  ;;  %v2688_v26 = vmul.f32 0.11111111, %v783_v25  ;;  %v1279_v3 = vsel %vm387_vm1, %v1277_v24, %v1278_v12  ;;  %v2989_v24 = vld [vmem:[#allocation12_spill] sm:$0xff] }
 0x12f   : > { %1314 = vrot.lane.b32.xlu1 %v2682_v19, %s1859_s24  ;;  %1312 = vrot.lane.b32.xlu0 %v2684_v9, %s1859_s24  ;;  %v2705_v15 = vadd.f32 %v1279_v3, %v1266_v45  ;;  %v749_v25 = vadd.f32 %v731_v43, %v2989_v24 }
 0x130   : > { %v807_v34 = vsub.f32 %v2688_v26, %v2613_v8  ;;  %1336 = vrot.lane.b32.xlu2 %v2639_v10, %s1860_s30  ;;  %v2997_v8 = vld [vmem:[#allocation19_spill] sm:$0xff] }
 0x131   : > { %v759_v16 = vpop.permute.xlu1 %758  ;;  %v757_v2 = vpop.permute.xlu0 %756 }
 0x132   : > { %v779_v41 = vadd.f32 %v759_v16, %v747_v46  ;;  %v778_v4 = vadd.f32 %v757_v2, %v746_v48  ;;  %v2703_v7 = vpop.permute.xlu2 %898 }
 0x134   : > { %v787_v29 = vmul.f32 0.11111111, %v779_v41  ;;  %v2707_v44 = vmul.f32 0.11111111, %v778_v4 }
 0x136   : > { %v803_v63 = vsub.f32 %v787_v29, %v2567_v39  ;;  %v802_v14 = vsub.f32 %v2707_v44, %v2459_v62 }
 0x137   : > { %1316 = vrot.lane.b32.xlu1 %v2705_v15, %s1859_s24  ;;  %1338 = vrot.lane.b32.xlu0 %v2659_v5, %s1860_s30 }
 0x138   : > { %1318 = vrot.lane.b32.xlu2 %v2709_v54, %s1859_s24 }
 0x139   : > { %v765_v12 = vpop.permute.xlu1 %764  ;;  %v763_v58 = vpop.permute.xlu0 %762 }
 0x13a   : > { %v782_v39 = vadd.f32 %v765_v12, %v750_v38  ;;  %v781_v46 = vadd.f32 %v763_v58, %v749_v25  ;;  %v921_v45 = vpop.permute.xlu2 %920  ;;  %v1200_v25 = vadd.f32 0.0001, %v2545_v60 }
 0x13c   : > { %v790_v27 = vmul.f32 0.11111111, %v782_v39  ;;  %v2723_v48 = vmul.f32 0.11111111, %v781_v46 }
 0x13e   : > { %v806_v3 = vsub.f32 %v790_v27, %v2611_v55  ;;  %v805_v53 = vsub.f32 %v2723_v48, %v2495_v49  ;;  %v2994_v49 = vld [vmem:[#allocation40_spill] sm:$0xff] }
 0x13f   : > { %1342 = vrot.lane.b32.xlu1 %v2661_v42, %s1860_s30  ;;  %1340 = vrot.lane.b32.xlu0 %v2657_v22, %s1860_s30 }
 0x140   : > { %1344 = vrot.lane.b32.xlu2 %v2684_v9, %s1860_s30 }
 0x141   : > { %v891_v56 = vpop.permute.xlu1 %890  ;;  %v889_v43 = vpop.permute.xlu0 %888 }
 0x142   : > { %v912_v16 = vadd.f32 %v889_v43, %v2336_v11  ;;  %v927_v2 = vpop.permute.xlu2 %926 }
 0x144   : > { %v944_v41 = vadd.f32 %v921_v45, %v912_v16 }
 0x146   : > { %v952_v4 = vmul.f32 0.11111111, %v944_v41 }
 0x147   : > { %1348 = vrot.lane.b32.xlu1 %v2705_v15, %s1860_s30  ;;  %1346 = vrot.lane.b32.xlu0 %v2682_v19, %s1860_s30 }
 0x148   : > { %v968_v55 = vsub.f32 %v952_v4, %v2521_v37  ;;  %1350 = vrot.lane.b32.xlu2 %v2709_v54, %s1860_s30 }
 0x149   : > { %v897_v29 = vpop.permute.xlu1 %896  ;;  %v895_v17 = vpop.permute.xlu0 %894 }
 0x14a   : > { %v1208_v38 = vadd.f32 %v968_v55, %v800_v30  ;;  %v915_v24 = vadd.f32 %v895_v17, %v2359_v18  ;;  %v933_v11 = vpop.permute.xlu2 %932  ;;  %v1203_v30 = vadd.f32 0.0001, %v2593_v51  ;;  %v913_v17 = vadd.f32 %v891_v56, %v2334_v13 }
 0x14b   : > { %v1206_v51 = vadd.f32 0.0001, %v2626_v36  ;;  %v2990_v36 = vsub.f32 %v2644_v52, %v2528_v31 }
 0x14c   : > { %v1216_v12 = vadd.f32 0.0009, %v1208_v38  ;;  %v947_v58 = vadd.f32 %v927_v2, %v915_v24  ;;  %v914_v2 = vadd.f32 %v2680_v28, %v2338_v23  ;;  %v916_v28 = vadd.f32 %v897_v29, %v2357_v20 }
 0x14e   : > { %v2744_v39 = vmul.f32 %v1216_v12, %v1200_v25  ;;  %v955_v46 = vmul.f32 0.11111111, %v947_v58 }
 0x150   : > { %v971_v45 = vsub.f32 %v955_v46, %v2572_v35 }
 0x151   : > { %v903_v27 = vpop.permute.xlu1 %902  ;;  %v901_v37 = vpop.permute.xlu0 %900 }
 0x152   : > { %v1211_v43 = vadd.f32 %v971_v45, %v803_v63  ;;  %v918_v16 = vadd.f32 %v901_v37, %v2381_v59  ;;  %v2748_v41 = vpop.permute.xlu2 %1058  ;;  %v1202_v37 = vadd.f32 0.0001, %v2476_v57  ;;  %v919_v57 = vadd.f32 %v903_v27, %v2379_v21 }
 0x154   : > { %v1219_v18 = vadd.f32 0.0009, %v1211_v43  ;;  %v950_v4 = vadd.f32 %v933_v11, %v918_v16  ;;  %v1201_v43 = vadd.f32 0.0001, %v2551_v6 }
 0x156   : > { %v2751_v55 = vmul.f32 %v1219_v18, %v1203_v30  ;;  %v958_v60 = vmul.f32 0.11111111, %v950_v4 }
 0x158   : > { %v974_v35 = vsub.f32 %v958_v60, %v2607_v33  ;;  %v917_v33 = vadd.f32 %v2703_v7, %v2361_v61  ;;  %v2992_v60 = vld [vmem:[#allocation25_spill] sm:$0xff] }
 0x159   : > { %v925_v38 = vpop.permute.xlu1 %924  ;;  %v923_v63 = vpop.permute.xlu0 %922 }
 0x15a   : > { %v1214_v24 = vadd.f32 %v974_v35, %v806_v3  ;;  %v946_v59 = vadd.f32 %v925_v38, %v914_v2  ;;  %v945_v25 = vadd.f32 %v923_v63, %v913_v17  ;;  %v2757_v12 = vpop.permute.xlu2 %1064  ;;  %v1205_v2 = vadd.f32 0.0001, %v2992_v60  ;;  %v2993_v63 = vld [vmem:[#allocation37_spill] sm:$0xff] }
 0x15c   : > { %v1222_v11 = vadd.f32 0.0009, %v1214_v24  ;;  %v954_v58 = vmul.f32 0.11111111, %v946_v59  ;;  %v953_v46 = vmul.f32 0.11111111, %v945_v25 }
 0x15d   : > { %v1204_v24 = vadd.f32 0.0001, %v2993_v63  ;;  %v3002_v63 = vld [vmem:[#allocation24_spill] sm:$0xff] }
 0x15e   : > { %v2760_v45 = vmul.f32 %v1222_v11, %v1206_v51  ;;  %v970_v23 = vsub.f32 %v954_v58, %v2461_v47  ;;  %v969_v13 = vsub.f32 %v953_v46, %v2535_v50  ;;  %v2995_v51 = vld [vmem:[#allocation41_spill] sm:$0xff] }
 0x15f   : > { %v1207_v11 = vadd.f32 0.0001, %v2995_v51  ;;  %v2996_v46 = vld [vmem:[#allocation21_spill] sm:$0xff] }
 0x160   : > { %v1210_v3 = vadd.f32 %v970_v23, %v802_v14  ;;  %v1209_v56 = vadd.f32 %v969_v13, %v2990_v36  ;;  %v2991_v14 = vsub.f32 %v2666_v1, %v2565_v0 }
 0x161   : > { %v931_v47 = vpop.permute.xlu1 %930  ;;  %v929_v16 = vpop.permute.xlu0 %928 }
 0x162   : > { %v1218_v50 = vadd.f32 0.0009, %v1210_v3  ;;  %v1217_v30 = vadd.f32 0.0009, %v1209_v56  ;;  %v949_v18 = vadd.f32 %v931_v47, %v917_v33  ;;  %v948_v61 = vadd.f32 %v929_v16, %v916_v28  ;;  %v2775_v7 = vpop.permute.xlu2 %1070  ;;  %v2998_v16 = vld [vmem:[#allocation27_spill] sm:$0xff] }
 0x164   : > { %v1226_v20 = vmul.f32 %v1218_v50, %v1202_v37  ;;  %v2777_v29 = vmul.f32 %v1217_v30, %v1201_v43  ;;  %v957_v62 = vmul.f32 0.11111111, %v949_v18  ;;  %v956_v44 = vmul.f32 0.11111111, %v948_v61  ;;  %v2999_v61 = vld [vmem:[#allocation18_spill] sm:$0xff] }
 0x166   : > { %v973_v52 = vsub.f32 %v957_v62, %v2503_v40  ;;  %v972_v31 = vsub.f32 %v956_v44, %v2581_v32  ;;  %1711 = vrcp.f32 %v1226_v20  ;;  %v1162_v62 = vadd.f32 0.0001, %v2999_v61  ;;  %v3008_v61 = vld [vmem:[#allocation20_spill] sm:$0xff] }
 0x168   : > { %v1213_v6 = vadd.f32 %v973_v52, %v805_v53  ;;  %v1212_v4 = vadd.f32 %v972_v31, %v2991_v14 }
 0x169   : > { %v1057_v17 = vpop.permute.xlu1 %1056  ;;  %v935_v35 = vpop.permute.xlu0 %934 }
 0x16a   : > { %v1221_v38 = vadd.f32 0.0009, %v1213_v6  ;;  %v1220_v40 = vadd.f32 0.0009, %v1212_v4  ;;  %v951_v59 = vadd.f32 %v935_v35, %v919_v57  ;;  %v1093_v32 = vpop.permute.xlu2 %1092  ;;  %v3000_v4 = vld [vmem:[#allocation17_spill] sm:$0xff]  ;;  %v3001_v35 = vld [vmem:[#allocation16_spill] sm:$0xff] }
 0x16b   : > { %v1081_v60 = vadd.f32 %v2748_v41, %v3000_v4 }
 0x16c   : > { %v1229_v25 = vmul.f32 %v1221_v38, %v1205_v2  ;;  %v2790_v21 = vmul.f32 %v1220_v40, %v1204_v24  ;;  %v959_v27 = vmul.f32 0.11111111, %v951_v59  ;;  %v1712_v33 = vpop.eup %1711  ;;  %v1080_v38 = vadd.f32 %v1057_v17, %v3001_v35 }
 0x16d   : > { %v1386_v36 = vmul.f32 %v1712_v33, %v1226_v20 }
 0x16e   : > { %v975_v48 = vsub.f32 %v959_v27, %v2994_v49  ;;  %1713 = vrcp.f32 %v1229_v25 }
 0x16f   : > { %1715 = vrcp.f32 %v2744_v39  ;;  %v1394_v43 = vsub.f32 2.0, %v1386_v36  ;;  %v3005_v36 = vld [vmem:[#allocation31_spill] sm:$0xff] }
 0x170   : > { %v1215_v0 = vadd.f32 %v975_v48, %v807_v34  ;;  %1717 = vrcp.f32 %v2777_v29 }
 0x171   : > { %v2796_v1 = vpop.permute.xlu1 %1062  ;;  %v1061_v53 = vpop.permute.xlu0 %1060  ;;  %v1402_v14 = vmul.f32 %v1712_v33, %v1394_v43  ;;  %1719 = vrcp.f32 %v2751_v55 }
 0x172   : > { %v1223_v58 = vadd.f32 0.0009, %v1215_v0  ;;  %v1082_v23 = vadd.f32 %v1061_v53, %v2996_v46  ;;  %v1099_v13 = vpop.permute.xlu2 %1098  ;;  %1721 = vrcp.f32 %v2790_v21  ;;  %v3003_v53 = vld [vmem:[#allocation23_spill] sm:$0xff] }
 0x173   : > { %v1165_v51 = vadd.f32 0.0001, %v3003_v53  ;;  %1723 = vrcp.f32 %v2760_v45 }
 0x174   : > { %v2800_v28 = vmul.f32 %v1223_v58, %v1207_v11  ;;  %v1114_v3 = vadd.f32 %v1093_v32, %v1082_v23  ;;  %v1714_v18 = vpop.eup %1713  ;;  %v3004_v23 = vld [vmem:[#allocation29_spill] sm:$0xff] }
 0x175   : > { %v1716_v52 = vpop.eup %1715  ;;  %v1389_v31 = vmul.f32 %v1714_v18, %v1229_v25 }
 0x176   : > { %v1122_v56 = vmul.f32 0.11111111, %v1114_v3  ;;  %v1718_v2 = vpop.eup %1717  ;;  %v1384_v25 = vmul.f32 %v1716_v52, %v2744_v39  ;;  %1725 = vrcp.f32 %v2800_v28 }
 0x177   : > { %v1397_v27 = vsub.f32 2.0, %v1389_v31  ;;  %v1385_v17 = vmul.f32 %v1718_v2, %v2777_v29  ;;  %v1720_v3 = vpop.eup %1719 }
 0x178   : > { %v1138_v26 = vsub.f32 %v1122_v56, %v2997_v8  ;;  %v1392_v33 = vsub.f32 2.0, %v1384_v25  ;;  %v3006_v8 = vld [vmem:[#allocation32_spill] sm:$0xff]  ;;  %v1722_v43 = vpop.eup %1721 }
 0x179   : > { %v2804_v34 = vpop.permute.xlu1 %1068  ;;  %v1067_v37 = vpop.permute.xlu0 %1066  ;;  %v1393_v29 = vsub.f32 2.0, %v1385_v17 }
 0x17a   : > { %v1170_v47 = vmul.f32 2.0, %v1138_v26  ;;  %v1085_v50 = vadd.f32 %v1067_v37, %v2998_v16  ;;  %v1305_v30 = vpop.permute.xlu2 %1304  ;;  %v1405_v37 = vmul.f32 %v1714_v18, %v1397_v27  ;;  %v1400_v4 = vmul.f32 %v1716_v52, %v1392_v33 }
 0x17c   : > { %v1178_v20 = vadd.f32 0.0009, %v1170_v47  ;;  %v1117_v44 = vadd.f32 %v1099_v13, %v1085_v50  ;;  %v1161_v13 = vadd.f32 0.0001, %v3004_v23  ;;  %v3007_v47 = vld [vmem:[#allocation22_spill] sm:$0xff]  ;;  %v1328_v50 = vadd.f32 %v1305_v30, %v2639_v10 }
 0x17d   : > { %v1084_v16 = vadd.f32 %v2757_v12, %v3007_v47  ;;  %v1387_v12 = vmul.f32 %v1720_v3, %v2751_v55  ;;  %v1724_v55 = vpop.eup %1723 }
 0x17e   : > { %v1186_v57 = vmul.f32 %v1178_v20, %v1162_v62  ;;  %v1125_v6 = vmul.f32 0.11111111, %v1117_v44  ;;  %v1083_v62 = vadd.f32 %v2796_v1, %v3008_v61 }
 0x180   : > { %v1141_v24 = vsub.f32 %v1125_v6, %v3002_v63  ;;  %v2815_v40 = vmul.f32 %v1402_v14, %v1186_v57  ;;  %v3009_v57 = vld [vmem:[#allocation30_spill] sm:$0xff] }
 0x181   : > { %v1091_v59 = vpop.permute.xlu1 %1090  ;;  %v1089_v32 = vpop.permute.xlu0 %1088  ;;  %v1160_v6 = vadd.f32 0.0001, %v3009_v57 }
 0x182   : > { %v1173_v49 = vmul.f32 2.0, %v1141_v24  ;;  %v1113_v48 = vadd.f32 %v1091_v59, %v1081_v60  ;;  %v1112_v41 = vadd.f32 %v1089_v32, %v1080_v38  ;;  %v2819_v0 = vpop.permute.xlu2 %1310  ;;  %v1388_v38 = vmul.f32 %v1722_v43, %v2790_v21 }
 0x183   : > { %v1401_v24 = vmul.f32 %v1718_v2, %v1393_v29  ;;  %v1726_v2 = vpop.eup %1725 }
 0x184   : > { %v1181_v11 = vadd.f32 0.0009, %v1173_v49  ;;  %v1121_v58 = vmul.f32 0.11111111, %v1113_v48  ;;  %v1120_v46 = vmul.f32 0.11111111, %v1112_v41 }
 0x185   : > { %v3010_v49 = vld [vmem:[#allocation35_spill] sm:$0xff]  ;;  %v3011_v41 = vld [vmem:[#allocation36_spill] sm:$0xff]  ;;  %v1396_v17 = vsub.f32 2.0, %v1388_v38 }
 0x186   : > { %v1189_v39 = vmul.f32 %v1181_v11, %v1165_v51  ;;  %v1137_v56 = vsub.f32 %v1121_v58, %v3005_v36  ;;  %v1136_v26 = vsub.f32 %v1120_v46, %v3006_v8  ;;  %v1395_v11 = vsub.f32 2.0, %v1387_v12  ;;  %v3012_v58 = vld [vmem:[#allocation28_spill] sm:$0xff] }
 0x187   : > { %v1087_v46 = vadd.f32 %v2775_v7, %v3012_v58  ;;  %v1404_v7 = vmul.f32 %v1722_v43, %v1396_v17 }
 0x188   : > { %v1169_v20 = vmul.f32 2.0, %v1137_v56  ;;  %v1168_v44 = vmul.f32 2.0, %v1136_v26  ;;  %v2834_v31 = vmul.f32 %v1405_v37, %v1189_v39  ;;  %v3013_v39 = vld [vmem:[#allocation33_spill] sm:$0xff]  ;;  %v3014_v56 = vld [vmem:[#allocation34_spill] sm:$0xff]  ;;  %v1403_v57 = vmul.f32 %v1720_v3, %v1395_v11 }
 0x189   : > { %v1097_v18 = vpop.permute.xlu1 %1096  ;;  %v1095_v14 = vpop.permute.xlu0 %1094  ;;  %v1164_v36 = vadd.f32 0.0001, %v3013_v39  ;;  %v1163_v8 = vadd.f32 0.0001, %v3014_v56  ;;  %v3015_v26 = vld [vmem:[#allocation26_spill] sm:$0xff]  ;;  %v1418_v56 = vsub.f32 1.0, %v2815_v40 }
 0x18a   : > { %v1177_v60 = vadd.f32 0.0009, %v1169_v20  ;;  %v1176_v10 = vadd.f32 0.0009, %v1168_v44  ;;  %v1116_v30 = vadd.f32 %v1097_v18, %v1084_v16  ;;  %v1115_v35 = vadd.f32 %v1095_v14, %v1083_v62  ;;  %v1337_v1 = vpop.permute.xlu2 %1336 }
 0x18b   : > { %v1360_v63 = vadd.f32 %v1337_v1, %v1328_v50  ;;  %v1086_v37 = vadd.f32 %v2804_v34, %v3015_v26  ;;  %v1391_v20 = vmul.f32 %v1726_v2, %v2800_v28  ;;  %v3017_v28 = vld [vmem:[#allocation43_spill] sm:$0xff] }
 0x18c   : > { %v1185_v59 = vmul.f32 %v1177_v60, %v1161_v13  ;;  %v1184_v32 = vmul.f32 %v1176_v10, %v1160_v6  ;;  %v1124_v25 = vmul.f32 0.11111111, %v1116_v30  ;;  %v1123_v27 = vmul.f32 0.11111111, %v1115_v35  ;;  %v3016_v30 = vld [vmem:[#allocation42_spill] sm:$0xff] }
 0x18d   : > { %v1368_v52 = vmul.f32 0.11111111, %v1360_v63  ;;  %v1390_v60 = vmul.f32 %v1724_v55, %v2760_v45  ;;  %v1399_v43 = vsub.f32 2.0, %v1391_v20 }
 0x18e   : > { %v1140_v48 = vsub.f32 %v1124_v25, %v3010_v49  ;;  %v1139_v21 = vsub.f32 %v1123_v27, %v3011_v41  ;;  %v1408_v53 = vmul.f32 %v1400_v4, %v1184_v32  ;;  %v1409_v51 = vmul.f32 %v1401_v24, %v1185_v59  ;;  %v3018_v25 = vld [vmem:[#allocation38_spill] sm:$0xff] }
 0x18f   : > { %1466 = vst.msk [vmem:[%s2846_s21] sm:$0xff] %vm1456_vm2, %v1368_v52  ;;  %v1398_v32 = vsub.f32 2.0, %v1390_v60  ;;  %v1167_v27 = vadd.f32 0.0001, %v3018_v25  ;;  %v1407_v17 = vmul.f32 %v1726_v2, %v1399_v43 }
 0x190   : > { %v1172_v23 = vmul.f32 2.0, %v1140_v48  ;;  %v1171_v13 = vmul.f32 2.0, %v1139_v21  ;;  %v1416_v33 = vsub.f32 1.0, %v1408_v53  ;;  %v3019_v48 = vld [vmem:[#allocation39_spill] sm:$0xff] }
 0x191   : > { %v1103_v29 = vpop.permute.xlu1 %1102  ;;  %v1101_v47 = vpop.permute.xlu0 %1100  ;;  %v1166_v41 = vadd.f32 0.0001, %v3019_v48  ;;  %v1406_v58 = vmul.f32 %v1724_v55, %v1398_v32 }
 0x192   : > { %v1180_v16 = vadd.f32 0.0009, %v1172_v23  ;;  %v1179_v50 = vadd.f32 0.0009, %v1171_v13  ;;  %v1424_v61 = vmul.f32 0.5, %v1416_v33  ;;  %v1119_v62 = vadd.f32 %v1103_v29, %v1087_v46 }
 0x193   : > { %v1118_v44 = vadd.f32 %v1101_v47, %v1086_v37  ;;  %v1417_v13 = vsub.f32 1.0, %v1409_v51 }
 0x194   : > { %v1188_v6 = vmul.f32 %v1180_v16, %v1164_v36  ;;  %v1187_v18 = vmul.f32 %v1179_v50, %v1163_v8  ;;  %v1432_v14 = vmax.f32 %v1424_v61, 0.0  ;;  %v1127_v4 = vmul.f32 0.11111111, %v1119_v62 }
 0x195   : > { %v1126_v12 = vmul.f32 0.11111111, %v1118_v44  ;;  %v1425_v36 = vmul.f32 0.5, %v1417_v13  ;;  %v1426_v16 = vmul.f32 0.5, %v1418_v56 }
 0x196   : > { %v1412_v34 = vmul.f32 %v1404_v7, %v1188_v6  ;;  %v1440_v10 = vmin.f32 %v1432_v14, 1.0  ;;  %v1143_v35 = vsub.f32 %v1127_v4, %v3016_v30  ;;  %v1411_v1 = vmul.f32 %v1403_v57, %v1187_v18 }
 0x197   : > { %v1142_v3 = vsub.f32 %v1126_v12, %v3017_v28  ;;  %v1433_v37 = vmax.f32 %v1425_v36, 0.0  ;;  %v1434_v7 = vmax.f32 %v1426_v16, 0.0  ;;  %v1331_v14 = vadd.f32 %v2819_v0, %v2661_v42 }
 0x198   : > { %v1448_v38 = vmul.f32 %v1440_v10, %v1368_v52  ;;  %v1175_v63 = vmul.f32 2.0, %v1143_v35  ;;  %v1319_v52 = vpop.permute.xlu2 %1318  ;;  %v1419_v8 = vsub.f32 1.0, %v1411_v1  ;;  %v1420_v50 = vsub.f32 1.0, %v1412_v34 }
 0x199   : > { %v1174_v24 = vmul.f32 2.0, %v1142_v3  ;;  %v1309_v59 = vpop.permute.xlu1 %1308  ;;  %v1307_v45 = vpop.permute.xlu0 %1306  ;;  %v1441_v62 = vmin.f32 %v1433_v37, 1.0  ;;  %v1442_v60 = vmin.f32 %v1434_v7, 1.0  ;;  %v1335_v1 = vadd.f32 %v1319_v52, %v2709_v54 }
 0x19a   : > { %1457 = vst.msk [vmem:[%s2866_s6] sm:$0xff] %vm1456_vm2, %v1448_v38  ;;  %v1183_v49 = vadd.f32 0.0009, %v1175_v63  ;;  %v1329_v26 = vadd.f32 %v1307_v45, %v2659_v5  ;;  %v1427_v61 = vmul.f32 0.5, %v1419_v8  ;;  %v1428_v40 = vmul.f32 0.5, %v1420_v50 }
 0x19b   : > { %v1182_v21 = vadd.f32 0.0009, %v1174_v24  ;;  %v1421_v5 = vsub.f32 1.0, %v2834_v31  ;;  %v1330_v4 = vadd.f32 %v1309_v59, %v2657_v22 }
 0x19c   : > { %v1191_v53 = vmul.f32 %v1183_v49, %v1167_v27  ;;  %v1435_v6 = vmax.f32 %v1427_v61, 0.0  ;;  %v1436_v10 = vmax.f32 %v1428_v40, 0.0 }
 0x19d   : > { %v1190_v11 = vmul.f32 %v1182_v21, %v1166_v41  ;;  %v1429_v31 = vmul.f32 0.5, %v1421_v5 }
 0x19e   : > { %v1415_v46 = vmul.f32 %v1407_v17, %v1191_v53  ;;  %v1443_v3 = vmin.f32 %v1435_v6, 1.0  ;;  %v1444_v63 = vmin.f32 %v1436_v10, 1.0 }
 0x19f   : > { %v1414_v23 = vmul.f32 %v1406_v58, %v1190_v11  ;;  %v1437_v54 = vmax.f32 %v1429_v31, 0.0 }
 0x1a0   : > { %v1345_v2 = vpop.permute.xlu2 %1344  ;;  %v1423_v57 = vsub.f32 1.0, %v1415_v46 }
 0x1a1   : > { %v1315_v33 = vpop.permute.xlu1 %1314  ;;  %v1313_v39 = vpop.permute.xlu0 %1312  ;;  %v1422_v18 = vsub.f32 1.0, %v1414_v23 }
 0x1a2   : > { %v1332_v51 = vadd.f32 %v1313_v39, %v2684_v9  ;;  %v1431_v28 = vmul.f32 0.5, %v1423_v57  ;;  %v1333_v45 = vadd.f32 %v1315_v33, %v2682_v19 }
 0x1a3   : > { %v1430_v43 = vmul.f32 0.5, %v1422_v18 }
 0x1a4   : > { %v1364_v12 = vadd.f32 %v1345_v2, %v1332_v51  ;;  %v1439_v27 = vmax.f32 %v1431_v28, 0.0 }
 0x1a5   : > { %v1438_v48 = vmax.f32 %v1430_v43, 0.0 }
 0x1a6   : > { %v1372_v42 = vmul.f32 0.11111111, %v1364_v12  ;;  %v1447_v11 = vmin.f32 %v1439_v27, 1.0 }
 0x1a7   : > { %v1446_v46 = vmin.f32 %v1438_v48, 1.0 }
 0x1a8   : > { %v1351_v22 = vpop.permute.xlu2 %1350  ;;  %v1452_v25 = vmul.f32 %v1444_v63, %v1372_v42  ;;  %1470 = vst.msk [vmem:[%s2846_s21 + $0x20] sm:$0xff] %vm1456_vm2, %v1372_v42 }
 0x1a9   : > { %v1317_v29 = vpop.permute.xlu1 %1316  ;;  %v1339_v47 = vpop.permute.xlu0 %1338  ;;  %v1367_v32 = vadd.f32 %v1351_v22, %v1335_v1 }
 0x1aa   : > { %v1361_v55 = vadd.f32 %v1339_v47, %v1329_v26  ;;  %v1334_v49 = vadd.f32 %v1317_v29, %v2705_v15  ;;  %1462 = vst.msk [vmem:[%s2866_s6 + $0x20] sm:$0xff] %vm1456_vm2, %v1452_v25  ;;  %v1445_v15 = vmin.f32 %v1437_v54, 1.0 }
 0x1ab   : > { %v1375_v17 = vmul.f32 0.11111111, %v1367_v32 }
 0x1ac   : > { %v1369_v20 = vmul.f32 0.11111111, %v1361_v55 }
 0x1ad   : > { %v1455_v33 = vmul.f32 %v1447_v11, %v1375_v17  ;;  %1473 = vst.msk [vmem:[%s2846_s21 + $0x38] sm:$0x3f] %vm1458_vm3, %v1375_v17 }
 0x1ae   : > { %v1449_v44 = vmul.f32 %v1441_v62, %v1369_v20  ;;  %1467 = vst.msk [vmem:[%s2846_s21 + $0x8] sm:$0x3f] %vm1458_vm3, %v1369_v20 }
 0x1af   : > { %1465 = vst.msk [vmem:[%s2866_s6 + $0x38] sm:$0x3f] %vm1458_vm3, %v1455_v33 }
 0x1b0   : > { %1459 = vst.msk [vmem:[%s2866_s6 + $0x8] sm:$0x3f] %vm1458_vm3, %v1449_v44 }
 0x1b1   : > { %v1343_v9 = vpop.permute.xlu1 %1342  ;;  %v1341_v34 = vpop.permute.xlu0 %1340 }
 0x1b2   : > { %v1363_v30 = vadd.f32 %v1343_v9, %v1331_v14  ;;  %v1362_v35 = vadd.f32 %v1341_v34, %v1330_v4 }
 0x1b4   : > { %v1371_v0 = vmul.f32 0.11111111, %v1363_v30  ;;  %v1370_v38 = vmul.f32 0.11111111, %v1362_v35 }
 0x1b6   : > { %v1451_v24 = vmul.f32 %v1443_v3, %v1371_v0  ;;  %1469 = vst.msk [vmem:[%s2846_s21 + $0x18] sm:$0x3f] %vm1458_vm3, %v1371_v0  ;;  %v1450_v59 = vmul.f32 %v1442_v60, %v1370_v38 }
 0x1b7   : > { %1468 = vst.msk [vmem:[%s2846_s21 + $0x10] sm:$0xff] %vm1456_vm2, %v1370_v38 }
 0x1b8   : > { %1461 = vst.msk [vmem:[%s2866_s6 + $0x18] sm:$0x3f] %vm1458_vm3, %v1451_v24 }
 0x1b9   : > { %1460 = vst.msk [vmem:[%s2866_s6 + $0x10] sm:$0xff] %vm1456_vm2, %v1450_v59  ;;  %v1349_v41 = vpop.permute.xlu1 %1348  ;;  %v1347_v21 = vpop.permute.xlu0 %1346 }
 0x1ba   : > { %v1366_v19 = vadd.f32 %v1349_v41, %v1334_v49  ;;  %v1365_v53 = vadd.f32 %v1347_v21, %v1333_v45 }
 0x1bc   : > { %v1374_v58 = vmul.f32 0.11111111, %v1366_v19  ;;  %v1373_v23 = vmul.f32 0.11111111, %v1365_v53 }
 0x1be   : > { %v1454_v52 = vmul.f32 %v1446_v46, %v1374_v58  ;;  %1472 = vst.msk [vmem:[%s2846_s21 + $0x30] sm:$0xff] %vm1456_vm2, %v1374_v58  ;;  %v1453_v13 = vmul.f32 %v1445_v15, %v1373_v23 }
 0x1bf   : > { %1471 = vst.msk [vmem:[%s2846_s21 + $0x28] sm:$0x3f] %vm1458_vm3, %v1373_v23 }
 0x1c0   : > { %1464 = vst.msk [vmem:[%s2866_s6 + $0x30] sm:$0xff] %vm1456_vm2, %v1454_v52 }
 0x1c1   : > { %1463 = vst.msk [vmem:[%s2866_s6 + $0x28] sm:$0x3f] %vm1458_vm3, %v1453_v13 }
 0x1c2 PF: > { %p18_p8 = scmp.ge.s32.totalorder %s1908_s20, 4   ;;  %s3020_s15 = smov %s1847_s16 }
 0x1c3   : > { %s3021_s16 = smov %s1851_s17  ;;  %s3022_s17 = smov %s1918_s23 }
 0x1c4   : > { %s3023_s18 = smov %s1908_s20  ;;  %20 = sbr.rel (!%p18_p8) target bundleno = 5 (0x5), region = 108 }
 0x1c9   :  { %1517 = vsyncpa [#allocation3], 1 }
 0x1ca   :  { %1519 = vsyncpa [#allocation3 + $0x1], 1 }
 0x1cb   :  { %1520 = vsyncpa [#allocation5], 1 }
 0x1cc   :  { %1522 = vsyncpa [#allocation5 + $0x1], 1 }

</bundles_post_ra>
